<compile_context>
chip_gen: v7x
topology: tpu7x:2x2x1
jax: 0.10.0
libtpu: 0.0.40
codegen_flags: <defaults>
</compile_context>

<pallas_src>
import functools

import jax
import jax.numpy as jnp
import numpy as np
from jax.experimental import pallas as pl
from jax.experimental.pallas import tpu as pltpu

EPS = 1e-5
MAX_SPATIAL_TILE = 1024  # lane-tile cap; a multiple of 128 whenever tiling kicks in


# ---------------------------------------------------------------------------
# Fused single-call kernel (primary path)
# ---------------------------------------------------------------------------
def _fused_kernel(x_ref, w_ref, gamma_ref, beta_ref, r_ref, o_ref,
                  y_vmem, sum_ref, sumsq_ref, scale_ref, shift_ref,
                  *, num_spatial_tiles, tile_cols, total_cols, inv_count, eps,
                  needs_mask):
    s = pl.program_id(0)   # pass: 0 = matmul + stats, 1 = BN/residual/ReLU epilogue
    n = pl.program_id(1)   # sample
    p = pl.program_id(2)   # spatial tile
    slot = n * num_spatial_tiles + p

    @pl.when(s == 0)
    def _matmul_and_stats():
        @pl.when((n == 0) & (p == 0))
        def _init():
            sum_ref[...] = jnp.zeros_like(sum_ref)
            sumsq_ref[...] = jnp.zeros_like(sumsq_ref)

        # 1x1 conv == matmul on the MXU: bf16 operands, f32 accumulation.
        w = w_ref[...].astype(jnp.bfloat16)                     # (Cout, Cin)
        x = x_ref[...].astype(jnp.bfloat16)                     # (Cin, tP)
        y = jnp.dot(w, x, preferred_element_type=jnp.float32)   # (Cout, tP) f32

        # Keep the conv output resident in VMEM for pass 1 (no HBM round trip,
        # and no bf16 re-rounding of y before the BN scale/shift is applied).
        y_vmem[slot] = y

        # Per-channel batch statistics.  The partial-tile mask is only built
        # when P % tP != 0 (statically known); the exact-divisor case stays
        # free of the iota/compare/select filler on every step.
        if needs_mask:
            col = jax.lax.broadcasted_iota(jnp.int32, y.shape, 1) + p * tile_cols
            ym = jnp.where(col < total_cols, y, 0.0)
        else:
            ym = y
        sum_ref[...] += jnp.sum(ym, axis=1, keepdims=True)        # (Cout, 1)
        sumsq_ref[...] += jnp.sum(ym * ym, axis=1, keepdims=True)

        # On the final matmul step fold BN (training-mode batch stats, biased
        # variance) into a single per-channel scale/shift FMA for pass 1.
        @pl.when((n == pl.num_programs(1) - 1) & (p == pl.num_programs(2) - 1))
        def _finalize():
            mean = sum_ref[...] * inv_count
            var = jnp.maximum(sumsq_ref[...] * inv_count - mean * mean, 0.0)
            inv_std = jax.lax.rsqrt(var + eps)
            scale = gamma_ref[...] * inv_std
            scale_ref[...] = scale
            shift_ref[...] = beta_ref[...] - mean * scale

    @pl.when(s == 1)
    def _epilogue():
        y = y_vmem[slot]                                          # (Cout, tP) f32
        out = y * scale_ref[...] + shift_ref[...] + r_ref[...].astype(jnp.float32)
        o_ref[...] = jnp.maximum(out, 0.0).astype(o_ref.dtype)


def _conv_bn_add_relu_fused(x, r, w, g, b, out_dtype, tP, PT, vmem_limit):
    N, Cin, P = x.shape
    Cout = w.shape[0]
    last_n, last_p = N - 1, PT - 1

    def x_map(s, n, p):
        # pass 0: track (n, p); pass 1: stay pinned on the final pass-0 block
        # so no new x DMAs are issued during the epilogue pass.
        return (jnp.where(s == 0, n, last_n), 0, jnp.where(s == 0, p, last_p))

    def r_or_out_map(s, n, p):
        # pass 0: pinned on block (0, 0) (prefetched once, reused at the first
        # pass-1 step); pass 1: track (n, p).
        return (jnp.where(s == 0, 0, n), 0, jnp.where(s == 0, 0, p))

    kernel = functools.partial(
        _fused_kernel,
        num_spatial_tiles=PT, tile_cols=tP, total_cols=P,
        inv_count=1.0 / float(N * P), eps=EPS, needs_mask=(P % tP != 0))

    return pl.pallas_call(
        kernel,
        out_shape=jax.ShapeDtypeStruct((N, Cout, P), out_dtype),
        grid_spec=pltpu.PrefetchScalarGridSpec(
            num_scalar_prefetch=0,
            grid=(2, N, PT),
            in_specs=[
                pl.BlockSpec((None, Cin, tP), x_map),                 # x
                pl.BlockSpec((Cout, Cin), lambda s, n, p: (0, 0)),    # weight (resident, f32)
                pl.BlockSpec((Cout, 1), lambda s, n, p: (0, 0)),      # gamma
                pl.BlockSpec((Cout, 1), lambda s, n, p: (0, 0)),      # beta
                pl.BlockSpec((None, Cout, tP), r_or_out_map),         # residual
            ],
            out_specs=pl.BlockSpec((None, Cout, tP), r_or_out_map),
            scratch_shapes=[
                pltpu.VMEM((N * PT, Cout, tP), jnp.float32),  # resident conv output y
                pltpu.VMEM((Cout, 1), jnp.float32),           # per-channel sum
                pltpu.VMEM((Cout, 1), jnp.float32),           # per-channel sum of squares
                pltpu.VMEM((Cout, 1), jnp.float32),           # folded BN scale
                pltpu.VMEM((Cout, 1), jnp.float32),           # folded BN shift
            ],
        ),
        compiler_params=pltpu.CompilerParams(
            dimension_semantics=("arbitrary", "arbitrary", "arbitrary"),
            vmem_limit_bytes=vmem_limit),
    )(x, w, g, b, r)


# ---------------------------------------------------------------------------
# Two-phase fallback (only when the resident-y scratch does not fit VMEM)
# ---------------------------------------------------------------------------
def _phase1_kernel(x_ref, w_ref, gamma_ref, beta_ref,
                   y_ref, scale_ref, shift_ref,
                   sum_ref, sumsq_ref,
                   *, tile_cols, total_cols, inv_count, eps, needs_mask):
    n = pl.program_id(0)
    p = pl.program_id(1)

    @pl.when((n == 0) & (p == 0))
    def _init():
        sum_ref[...] = jnp.zeros_like(sum_ref)
        sumsq_ref[...] = jnp.zeros_like(sumsq_ref)

    w = w_ref[...].astype(jnp.bfloat16)
    x = x_ref[...].astype(jnp.bfloat16)
    y = jnp.dot(w, x, preferred_element_type=jnp.float32)        # (Cout, tP)
    y_ref[...] = y.astype(y_ref.dtype)                           # bf16 staging to HBM

    if needs_mask:
        col = jax.lax.broadcasted_iota(jnp.int32, y.shape, 1) + p * tile_cols
        y = jnp.where(col < total_cols, y, 0.0)
    sum_ref[...] += jnp.sum(y, axis=1, keepdims=True)
    sumsq_ref[...] += jnp.sum(y * y, axis=1, keepdims=True)

    @pl.when((n == pl.num_programs(0) - 1) & (p == pl.num_programs(1) - 1))
    def _finalize():
        mean = sum_ref[...] * inv_count
        var = jnp.maximum(sumsq_ref[...] * inv_count - mean * mean, 0.0)
        inv_std = jax.lax.rsqrt(var + eps)
        scale = gamma_ref[...] * inv_std
        scale_ref[...] = scale
        shift_ref[...] = beta_ref[...] - mean * scale


def _phase2_kernel(y_ref, r_ref, scale_ref, shift_ref, o_ref):
    y = y_ref[...].astype(jnp.float32)
    out = y * scale_ref[...] + shift_ref[...] + r_ref[...].astype(jnp.float32)
    o_ref[...] = jnp.maximum(out, 0.0).astype(o_ref.dtype)


def _conv_bn_add_relu_two_phase(x, r, w, g, b, out_dtype, tP, PT, vmem_limit):
    # TODO(synk): for v7x megacore, phase 1 could emit per-sample partial sums
    # (parallel over N) instead of a single sequential accumulator.
    N, Cin, P = x.shape
    Cout = w.shape[0]
    needs_mask = (P % tP != 0)

    phase1 = functools.partial(
        _phase1_kernel, tile_cols=tP, total_cols=P,
        inv_count=1.0 / float(N * P), eps=EPS, needs_mask=needs_mask)

    y_stage, scale, shift = pl.pallas_call(
        phase1,
        out_shape=(
            jax.ShapeDtypeStruct((N, Cout, P), jnp.bfloat16),  # staged conv output
            jax.ShapeDtypeStruct((Cout, 1), jnp.float32),      # folded BN scale
            jax.ShapeDtypeStruct((Cout, 1), jnp.float32),      # folded BN shift
        ),
        grid_spec=pltpu.PrefetchScalarGridSpec(
            num_scalar_prefetch=0,
            grid=(N, PT),
            in_specs=[
                pl.BlockSpec((None, Cin, tP), lambda n, p: (n, 0, p)),
                pl.BlockSpec((Cout, Cin), lambda n, p: (0, 0)),
                pl.BlockSpec((Cout, 1), lambda n, p: (0, 0)),
                pl.BlockSpec((Cout, 1), lambda n, p: (0, 0)),
            ],
            out_specs=[
                pl.BlockSpec((None, Cout, tP), lambda n, p: (n, 0, p)),
                pl.BlockSpec((Cout, 1), lambda n, p: (0, 0)),
                pl.BlockSpec((Cout, 1), lambda n, p: (0, 0)),
            ],
            scratch_shapes=[
                pltpu.VMEM((Cout, 1), jnp.float32),
                pltpu.VMEM((Cout, 1), jnp.float32),
            ],
        ),
        compiler_params=pltpu.CompilerParams(
            dimension_semantics=("arbitrary", "arbitrary"),
            vmem_limit_bytes=vmem_limit),
    )(x, w, g, b)

    return pl.pallas_call(
        _phase2_kernel,
        out_shape=jax.ShapeDtypeStruct((N, Cout, P), out_dtype),
        grid_spec=pltpu.PrefetchScalarGridSpec(
            num_scalar_prefetch=0,
            grid=(N, PT),
            in_specs=[
                pl.BlockSpec((None, Cout, tP), lambda n, p: (n, 0, p)),
                pl.BlockSpec((None, Cout, tP), lambda n, p: (n, 0, p)),
                pl.BlockSpec((Cout, 1), lambda n, p: (0, 0)),
                pl.BlockSpec((Cout, 1), lambda n, p: (0, 0)),
            ],
            out_specs=pl.BlockSpec((None, Cout, tP), lambda n, p: (n, 0, p)),
        ),
        compiler_params=pltpu.CompilerParams(
            dimension_semantics=("parallel", "parallel"),
            vmem_limit_bytes=vmem_limit),
    )(y_stage, r, scale, shift)


# ---------------------------------------------------------------------------
# Wrapper
# ---------------------------------------------------------------------------
def _round_up(v, m):
    return ((v + m - 1) // m) * m


def _vmem_limit_bytes():
    """v7x-safe (64 MiB physical) limit that still lets v5e/v6e (128 MiB) use more."""
    try:
        cap = int(pltpu.get_tpu_info().vmem_capacity_bytes)
    except Exception:
        cap = 64 * 1024 * 1024
    return max(32 * 1024 * 1024, min(int(cap * 0.75), 100 * 1024 * 1024))


def _fused_vmem_bytes(N, Cin, Cout, P, tP, PT):
    """Rough upper bound on the fused call's VMEM footprint (bytes)."""
    lane = lambda v: _round_up(v, 128)
    sub = lambda v: _round_up(v, 8)
    y_res = N * PT * sub(Cout) * lane(tP) * 4            # resident conv output (f32)
    w_res = 2 * sub(Cout) * lane(Cin) * 4                # double-buffered resident weight
    x_blk = 2 * sub(Cin) * lane(tP) * 4                  # double-buffered x block
    ro_blk = 2 * 2 * sub(Cout) * lane(tP) * 4            # residual + output blocks
    vecs = 8 * sub(Cout) * 128 * 4                       # gamma/beta + stat/scale scratch
    return y_res + w_res + x_blk + ro_blk + vecs


def conv_bn_add_relu(x_nchw, residual_nchw, weight, gamma, beta):
    """Forward of Conv2d(1x1, bias=False) -> BatchNorm2d(train) -> +residual -> ReLU.

    x_nchw, residual_nchw: (N, C, H, W); weight: (Cout, Cin) or (Cout, Cin, 1, 1);
    gamma/beta: (Cout,).  Returns (N, Cout, H, W) in the input dtype.
    """
    N, Cin, H, W = x_nchw.shape
    Cout = weight.shape[0]
    weight = weight.reshape(Cout, Cin)
    P = H * W

    # NCHW -> (N, C, H*W): contiguous reshape, no transposes / extra HBM passes.
    x = x_nchw.reshape(N, Cin, P)
    r = residual_nchw.reshape(N, Cout, P)
    w = weight.astype(jnp.float32)            # read once from HBM; cast to bf16 in-kernel
    g = gamma.reshape(Cout, 1).astype(jnp.float32)
    b = beta.reshape(Cout, 1).astype(jnp.float32)

    # Spatial tile: full extent when small (14*14=196 at the real size),
    # otherwise a lane-dense multiple of 128 (large tiles amortize grid-step
    # overhead and DMA count).
    tP = P if P <= MAX_SPATIAL_TILE else MAX_SPATIAL_TILE
    PT = pl.cdiv(P, tP)

    vmem_limit = _vmem_limit_bytes()
    out_dtype = x_nchw.dtype

    if _fused_vmem_bytes(N, Cin, Cout, P, tP, PT) <= int(vmem_limit * 0.85):
        out = _conv_bn_add_relu_fused(x, r, w, g, b, out_dtype, tP, PT, vmem_limit)
    else:
        out = _conv_bn_add_relu_two_phase(x, r, w, g, b, out_dtype, tP, PT, vmem_limit)
    return out.reshape(N, Cout, H, W)


def reference(x_nchw, residual_nchw, weight_oi, gamma, beta):
    """Pure-JAX f32 reference of the same forward math."""
    N, Cin, H, W = x_nchw.shape
    Cout = weight_oi.shape[0]
    xf = x_nchw.reshape(N, Cin, H * W).astype(jnp.float32)
    y = jnp.einsum('oi,nip->nop', weight_oi.astype(jnp.float32), xf)
    mean = jnp.mean(y, axis=(0, 2), keepdims=True)
    var = jnp.mean((y - mean) ** 2, axis=(0, 2), keepdims=True)
    y_hat = (y - mean) * jax.lax.rsqrt(var + EPS)
    out = (gamma.reshape(1, Cout, 1) * y_hat + beta.reshape(1, Cout, 1)
           + residual_nchw.reshape(N, Cout, H * W).astype(jnp.float32))
    return jnp.maximum(out, 0.0).reshape(N, Cout, H, W)


if __name__ == "__main__":
    # Small shapes consistent with the module (NCHW, Cin == Cout, 1x1 conv).
    N, C, H, W = 2, 128, 8, 8

    key = jax.random.PRNGKey(0)
    k1, k2, k3, k4, k5 = jax.random.split(key, 5)
    x155 = jax.random.normal(k1, (N, C, H, W), dtype=jnp.float32)       # conv input
    x149 = jax.random.normal(k2, (N, C, H, W), dtype=jnp.float32)       # residual
    weight = 0.05 * jax.random.normal(k3, (C, C), dtype=jnp.float32)    # (Cout, Cin)
    gamma = 1.0 + 0.1 * jax.random.normal(k4, (C,), dtype=jnp.float32)  # BN weight
    beta = 0.1 * jax.random.normal(k5, (C,), dtype=jnp.float32)         # BN bias

    out = jax.block_until_ready(conv_bn_add_relu(x155, x149, weight, gamma, beta))
    ref = jax.block_until_ready(reference(x155, x149, weight, gamma, beta))

    # bf16 MXU operands => bf16-aware tolerance vs the f32 reference.
    np.testing.assert_allclose(np.asarray(out), np.asarray(ref), rtol=5e-2, atol=5e-2)

    print("KERNEL_OK")
</pallas_src>

<mosaic_0001>
module attributes {stable_mosaic.version = 11 : i64} {
  func.func @_fused_kernel(%arg0: i32, %arg1: i32, %arg2: i32, %arg3: memref<1x128x64xf32, #tpu.memory_space<vmem>>, %arg4: memref<128x128xf32, #tpu.memory_space<vmem>>, %arg5: memref<128x1xf32, #tpu.memory_space<vmem>>, %arg6: memref<128x1xf32, #tpu.memory_space<vmem>>, %arg7: memref<1x128x64xf32, #tpu.memory_space<vmem>>, %arg8: memref<1x128x64xf32, #tpu.memory_space<vmem>>, %arg9: memref<2x128x64xf32, #tpu.memory_space<vmem>>, %arg10: memref<128x1xf32, #tpu.memory_space<vmem>>, %arg11: memref<128x1xf32, #tpu.memory_space<vmem>>, %arg12: memref<128x1xf32, #tpu.memory_space<vmem>>, %arg13: memref<128x1xf32, #tpu.memory_space<vmem>>) attributes {dimension_semantics = [#tpu.dimension_semantics<arbitrary>, #tpu.dimension_semantics<arbitrary>, #tpu.dimension_semantics<arbitrary>], iteration_bounds = array<i64: 2, 2, 1>, scalar_prefetch = 0 : i64, scratch_operands = 5 : i64, tpu.core_type = #tpu.core_type<tc>, window_params = [{transform_indices = @transform_0, window_bounds = array<i64: 1, 128, 64>}, {pipeline_mode = #tpu.pipeline_mode<synchronous>, transform_indices = @transform_1, window_bounds = array<i64: 128, 128>}, {pipeline_mode = #tpu.pipeline_mode<synchronous>, transform_indices = @transform_2, window_bounds = array<i64: 128, 1>}, {pipeline_mode = #tpu.pipeline_mode<synchronous>, transform_indices = @transform_3, window_bounds = array<i64: 128, 1>}, {transform_indices = @transform_4, window_bounds = array<i64: 1, 128, 64>}, {transform_indices = @transform_5, window_bounds = array<i64: 1, 128, 64>}]} {
    %c1_i32 = arith.constant 1 : i32
    %0 = arith.muli %arg1, %c1_i32 : i32
    %1 = arith.addi %0, %arg2 : i32
    %c0_i32 = arith.constant 0 : i32
    %2 = arith.cmpi eq, %arg0, %c0_i32 : i32
    %3 = arith.extui %2 : i1 to i32
    %c0_i32_0 = arith.constant 0 : i32
    %4 = arith.cmpi ne, %3, %c0_i32_0 : i32
    scf.if %4 {
      %c0_i32_3 = arith.constant 0 : i32
      %8 = arith.cmpi eq, %arg1, %c0_i32_3 : i32
      %c0_i32_4 = arith.constant 0 : i32
      %9 = arith.cmpi eq, %arg2, %c0_i32_4 : i32
      %10 = arith.andi %8, %9 : i1
      %11 = arith.extui %10 : i1 to i32
      %c0_i32_5 = arith.constant 0 : i32
      %12 = arith.cmpi ne, %11, %c0_i32_5 : i32
      scf.if %12 {
        %cst_25 = arith.constant 0.000000e+00 : f32
        %39 = vector.broadcast %cst_25 : f32 to vector<128x1xf32>
        %c0_26 = arith.constant 0 : index
        %c0_27 = arith.constant 0 : index
        %40 = vector.load %arg10[%c0_26, %c0_27] : memref<128x1xf32, #tpu.memory_space<vmem>>, vector<128x1xf32>
        tpu.vector_store %arg10[%c0_26, %c0_27], %39 {strides = array<i32>} : memref<128x1xf32, #tpu.memory_space<vmem>>, vector<128x1xf32>,
        %cst_28 = arith.constant 0.000000e+00 : f32
        %41 = vector.broadcast %cst_28 : f32 to vector<128x1xf32>
        %c0_29 = arith.constant 0 : index
        %c0_30 = arith.constant 0 : index
        %42 = vector.load %arg11[%c0_29, %c0_30] : memref<128x1xf32, #tpu.memory_space<vmem>>, vector<128x1xf32>
        tpu.vector_store %arg11[%c0_29, %c0_30], %41 {strides = array<i32>} : memref<128x1xf32, #tpu.memory_space<vmem>>, vector<128x1xf32>,
      } else {
      }
      %c0 = arith.constant 0 : index
      %c0_6 = arith.constant 0 : index
      %13 = vector.load %arg4[%c0, %c0_6] : memref<128x128xf32, #tpu.memory_space<vmem>>, vector<128x128xf32>
      %14 = arith.truncf %13 : vector<128x128xf32> to vector<128x128xbf16>
      %c0_7 = arith.constant 0 : index
      %c0_8 = arith.constant 0 : index
      %c0_9 = arith.constant 0 : index
      %15 = vector.load %arg3[%c0_7, %c0_8, %c0_9] : memref<1x128x64xf32, #tpu.memory_space<vmem>>, vector<1x128x64xf32>
      %16 = vector.shape_cast %15 : vector<1x128x64xf32> to vector<128x64xf32>
      %17 = arith.truncf %16 : vector<128x64xf32> to vector<128x64xbf16>
      %cst = arith.constant dense<0.000000e+00> : vector<128x64xf32>
      %18 = tpu.matmul %14, %17, %cst {dimension_numbers = #tpu.dot_dimension_numbers<[1], [0], [0], [1], [0, 0, 1, 1], [], []>} : vector<128x128xbf16>, vector<128x64xbf16>, vector<128x64xf32> -> vector<128x64xf32>
      %19 = arith.index_cast %1 : i32 to index
      %c0_10 = arith.constant 0 : index
      %c0_11 = arith.constant 0 : index
      %20 = vector.load %arg9[%19, %c0_10, %c0_11] : memref<2x128x64xf32, #tpu.memory_space<vmem>>, vector<1x128x64xf32>
      %21 = vector.shape_cast %20 : vector<1x128x64xf32> to vector<128x64xf32>
      %22 = vector.shape_cast %18 : vector<128x64xf32> to vector<1x128x64xf32>
      tpu.vector_store %arg9[%19, %c0_10, %c0_11], %22 {strides = array<i32>} : memref<2x128x64xf32, #tpu.memory_space<vmem>>, vector<1x128x64xf32>,
      %c0_12 = arith.constant 0 : index
      %c0_13 = arith.constant 0 : index
      %23 = vector.load %arg10[%c0_12, %c0_13] : memref<128x1xf32, #tpu.memory_space<vmem>>, vector<128x1xf32>
      %cst_14 = arith.constant dense<0.000000e+00> : vector<128xf32>
      %24 = vector.multi_reduction <add>, %18, %cst_14 [1] : vector<128x64xf32> to vector<128xf32>
      %25 = vector.shape_cast %24 : vector<128xf32> to vector<128x1xf32>
      %26 = arith.addf %23, %25 : vector<128x1xf32>
      %c0_15 = arith.constant 0 : index
      %c0_16 = arith.constant 0 : index
      %27 = vector.load %arg10[%c0_15, %c0_16] : memref<128x1xf32, #tpu.memory_space<vmem>>, vector<128x1xf32>
      tpu.vector_store %arg10[%c0_15, %c0_16], %26 {strides = array<i32>} : memref<128x1xf32, #tpu.memory_space<vmem>>, vector<128x1xf32>,
      %c0_17 = arith.constant 0 : index
      %c0_18 = arith.constant 0 : index
      %28 = vector.load %arg11[%c0_17, %c0_18] : memref<128x1xf32, #tpu.memory_space<vmem>>, vector<128x1xf32>
      %29 = arith.mulf %18, %18 : vector<128x64xf32>
      %cst_19 = arith.constant dense<0.000000e+00> : vector<128xf32>
      %30 = vector.multi_reduction <add>, %29, %cst_19 [1] : vector<128x64xf32> to vector<128xf32>
      %31 = vector.shape_cast %30 : vector<128xf32> to vector<128x1xf32>
      %32 = arith.addf %28, %31 : vector<128x1xf32>
      %c0_20 = arith.constant 0 : index
      %c0_21 = arith.constant 0 : index
      %33 = vector.load %arg11[%c0_20, %c0_21] : memref<128x1xf32, #tpu.memory_space<vmem>>, vector<128x1xf32>
      tpu.vector_store %arg11[%c0_20, %c0_21], %32 {strides = array<i32>} : memref<128x1xf32, #tpu.memory_space<vmem>>, vector<128x1xf32>,
      %c1_i32_22 = arith.constant 1 : i32
      %34 = arith.cmpi eq, %arg1, %c1_i32_22 : i32
      %c0_i32_23 = arith.constant 0 : i32
      %35 = arith.cmpi eq, %arg2, %c0_i32_23 : i32
      %36 = arith.andi %34, %35 : i1
      %37 = arith.extui %36 : i1 to i32
      %c0_i32_24 = arith.constant 0 : i32
      %38 = arith.cmpi ne, %37, %c0_i32_24 : i32
      scf.if %38 {
        %c0_25 = arith.constant 0 : index
        %c0_26 = arith.constant 0 : index
        %39 = vector.load %arg10[%c0_25, %c0_26] : memref<128x1xf32, #tpu.memory_space<vmem>>, vector<128x1xf32>
        %cst_27 = arith.constant 7.812500e-03 : f32
        %40 = vector.broadcast %cst_27 : f32 to vector<128x1xf32>
        %41 = arith.mulf %39, %40 : vector<128x1xf32>
        %c0_28 = arith.constant 0 : index
        %c0_29 = arith.constant 0 : index
        %42 = vector.load %arg11[%c0_28, %c0_29] : memref<128x1xf32, #tpu.memory_space<vmem>>, vector<128x1xf32>
        %cst_30 = arith.constant 7.812500e-03 : f32
        %43 = vector.broadcast %cst_30 : f32 to vector<128x1xf32>
        %44 = arith.mulf %42, %43 : vector<128x1xf32>
        %45 = arith.mulf %41, %41 : vector<128x1xf32>
        %46 = arith.subf %44, %45 : vector<128x1xf32>
        %cst_31 = arith.constant 0.000000e+00 : f32
        %47 = vector.broadcast %cst_31 : f32 to vector<128x1xf32>
        %48 = arith.maximumf %46, %47 : vector<128x1xf32>
        %cst_32 = arith.constant 9.99999974E-6 : f32
        %49 = vector.broadcast %cst_32 : f32 to vector<128x1xf32>
        %50 = arith.addf %48, %49 : vector<128x1xf32>
        %51 = math.rsqrt %50 : vector<128x1xf32>
        %c0_33 = arith.constant 0 : index
        %c0_34 = arith.constant 0 : index
        %52 = vector.load %arg5[%c0_33, %c0_34] : memref<128x1xf32, #tpu.memory_space<vmem>>, vector<128x1xf32>
        %53 = arith.mulf %52, %51 : vector<128x1xf32>
        %c0_35 = arith.constant 0 : index
        %c0_36 = arith.constant 0 : index
        %54 = vector.load %arg12[%c0_35, %c0_36] : memref<128x1xf32, #tpu.memory_space<vmem>>, vector<128x1xf32>
        tpu.vector_store %arg12[%c0_35, %c0_36], %53 {strides = array<i32>} : memref<128x1xf32, #tpu.memory_space<vmem>>, vector<128x1xf32>,
        %c0_37 = arith.constant 0 : index
        %c0_38 = arith.constant 0 : index
        %55 = vector.load %arg6[%c0_37, %c0_38] : memref<128x1xf32, #tpu.memory_space<vmem>>, vector<128x1xf32>
        %56 = arith.mulf %41, %53 : vector<128x1xf32>
        %57 = arith.subf %55, %56 : vector<128x1xf32>
        %c0_39 = arith.constant 0 : index
        %c0_40 = arith.constant 0 : index
        %58 = vector.load %arg13[%c0_39, %c0_40] : memref<128x1xf32, #tpu.memory_space<vmem>>, vector<128x1xf32>
        tpu.vector_store %arg13[%c0_39, %c0_40], %57 {strides = array<i32>} : memref<128x1xf32, #tpu.memory_space<vmem>>, vector<128x1xf32>,
      } else {
      }
    } else {
    }
    %c1_i32_1 = arith.constant 1 : i32
    %5 = arith.cmpi eq, %arg0, %c1_i32_1 : i32
    %6 = arith.extui %5 : i1 to i32
    %c0_i32_2 = arith.constant 0 : i32
    %7 = arith.cmpi ne, %6, %c0_i32_2 : i32
    scf.if %7 {
      %8 = arith.index_cast %1 : i32 to index
      %c0 = arith.constant 0 : index
      %c0_3 = arith.constant 0 : index
      %9 = vector.load %arg9[%8, %c0, %c0_3] : memref<2x128x64xf32, #tpu.memory_space<vmem>>, vector<1x128x64xf32>
      %10 = vector.shape_cast %9 : vector<1x128x64xf32> to vector<128x64xf32>
      %c0_4 = arith.constant 0 : index
      %c0_5 = arith.constant 0 : index
      %11 = vector.load %arg12[%c0_4, %c0_5] : memref<128x1xf32, #tpu.memory_space<vmem>>, vector<128x1xf32>
      %12 = vector.broadcast %11 : vector<128x1xf32> to vector<128x64xf32>
      %13 = arith.mulf %10, %12 : vector<128x64xf32>
      %c0_6 = arith.constant 0 : index
      %c0_7 = arith.constant 0 : index
      %14 = vector.load %arg13[%c0_6, %c0_7] : memref<128x1xf32, #tpu.memory_space<vmem>>, vector<128x1xf32>
      %15 = vector.broadcast %14 : vector<128x1xf32> to vector<128x64xf32>
      %16 = arith.addf %13, %15 : vector<128x64xf32>
      %c0_8 = arith.constant 0 : index
      %c0_9 = arith.constant 0 : index
      %c0_10 = arith.constant 0 : index
      %17 = vector.load %arg7[%c0_8, %c0_9, %c0_10] : memref<1x128x64xf32, #tpu.memory_space<vmem>>, vector<1x128x64xf32>
      %18 = vector.shape_cast %17 : vector<1x128x64xf32> to vector<128x64xf32>
      %19 = arith.addf %16, %18 : vector<128x64xf32>
      %cst = arith.constant 0.000000e+00 : f32
      %20 = vector.broadcast %cst : f32 to vector<128x64xf32>
      %21 = arith.maximumf %19, %20 : vector<128x64xf32>
      %c0_11 = arith.constant 0 : index
      %c0_12 = arith.constant 0 : index
      %c0_13 = arith.constant 0 : index
      %22 = vector.load %arg8[%c0_11, %c0_12, %c0_13] : memref<1x128x64xf32, #tpu.memory_space<vmem>>, vector<1x128x64xf32>
      %23 = vector.shape_cast %22 : vector<1x128x64xf32> to vector<128x64xf32>
      %24 = vector.shape_cast %21 : vector<128x64xf32> to vector<1x128x64xf32>
      tpu.vector_store %arg8[%c0_11, %c0_12, %c0_13], %24 {strides = array<i32>} : memref<1x128x64xf32, #tpu.memory_space<vmem>>, vector<1x128x64xf32>,
    } else {
    }
    return
  }
  func.func @transform_0(%arg0: i32, %arg1: i32, %arg2: i32) -> (i32, i32, i32) {
    %c0_i32 = arith.constant 0 : i32
    %0 = arith.cmpi eq, %arg0, %c0_i32 : i32
    %c1_i32 = arith.constant 1 : i32
    %1 = arith.select %0, %arg1, %c1_i32 : i32
    %c0_i32_0 = arith.constant 0 : i32
    %2 = arith.cmpi eq, %arg0, %c0_i32_0 : i32
    %c0_i32_1 = arith.constant 0 : i32
    %3 = arith.select %2, %arg2, %c0_i32_1 : i32
    %c0_i32_2 = arith.constant 0 : i32
    %c0_i32_3 = arith.constant 0 : i32
    return %1, %c0_i32_2, %3 : i32, i32, i32
  }
  func.func @transform_1(%arg0: i32, %arg1: i32, %arg2: i32) -> (i32, i32) {
    %c0_i32 = arith.constant 0 : i32
    %c0_i32_0 = arith.constant 0 : i32
    %c0_i32_1 = arith.constant 0 : i32
    return %c0_i32, %c0_i32_0 : i32, i32
  }
  func.func @transform_2(%arg0: i32, %arg1: i32, %arg2: i32) -> (i32, i32) {
    %c0_i32 = arith.constant 0 : i32
    %c0_i32_0 = arith.constant 0 : i32
    %c0_i32_1 = arith.constant 0 : i32
    return %c0_i32, %c0_i32_0 : i32, i32
  }
  func.func @transform_3(%arg0: i32, %arg1: i32, %arg2: i32) -> (i32, i32) {
    %c0_i32 = arith.constant 0 : i32
    %c0_i32_0 = arith.constant 0 : i32
    %c0_i32_1 = arith.constant 0 : i32
    return %c0_i32, %c0_i32_0 : i32, i32
  }
  func.func @transform_4(%arg0: i32, %arg1: i32, %arg2: i32) -> (i32, i32, i32) {
    %c0_i32 = arith.constant 0 : i32
    %0 = arith.cmpi eq, %arg0, %c0_i32 : i32
    %c0_i32_0 = arith.constant 0 : i32
    %1 = arith.select %0, %c0_i32_0, %arg1 : i32
    %c0_i32_1 = arith.constant 0 : i32
    %2 = arith.cmpi eq, %arg0, %c0_i32_1 : i32
    %c0_i32_2 = arith.constant 0 : i32
    %3 = arith.select %2, %c0_i32_2, %arg2 : i32
    %c0_i32_3 = arith.constant 0 : i32
    %c0_i32_4 = arith.constant 0 : i32
    return %1, %c0_i32_3, %3 : i32, i32, i32
  }
  func.func @transform_5(%arg0: i32, %arg1: i32, %arg2: i32) -> (i32, i32, i32) {
    %c0_i32 = arith.constant 0 : i32
    %0 = arith.cmpi eq, %arg0, %c0_i32 : i32
    %c0_i32_0 = arith.constant 0 : i32
    %1 = arith.select %0, %c0_i32_0, %arg1 : i32
    %c0_i32_1 = arith.constant 0 : i32
    %2 = arith.cmpi eq, %arg0, %c0_i32_1 : i32
    %c0_i32_2 = arith.constant 0 : i32
    %3 = arith.select %2, %c0_i32_2, %arg2 : i32
    %c0_i32_3 = arith.constant 0 : i32
    %c0_i32_4 = arith.constant 0 : i32
    return %1, %c0_i32_3, %3 : i32, i32, i32
  }
}

</mosaic_0001>

<bundles_post_ra>
// kernel: tpu_custom_call.1
= control target key start
LH: loop header
LB: loop body
LE: loop exit
PB: predicated region body
PF: predicated region fallthrough
CT: control target
= control target key end

     0   :  { %s1700_s18 = smov 0   ;;  %s1702_s19 = smov 0   ;;  %s2291_s0 = inlined_call_operand.vmem [shape: f32[2,128,64], index: 0, kind: input, shape index: {}]   ;;  %s2292_s1 = inlined_call_operand.vmem [shape: f32[128,128], index: 1, kind: input, shape index: {}]   ;;  %s2293_s2 = inlined_call_operand.vmem [shape: f32[128,1], index: 2, kind: input, shape index: {}]   ;;  %s2294_s3 = inlined_call_operand.vmem [shape: f32[128,1], index: 3, kind: input, shape index: {}]   ;;  %s2295_s4 = inlined_call_operand.vmem [shape: f32[2,128,64], index: 4, kind: input, shape index: {}]   ;;  %s2296_s5 = inlined_call_operand.vmem [shape: f32[2,128,64], index: 5, kind: output, shape index: {}]  }
   0x1   :  { %s1704_s20 = smov 0   ;;  %s1706_s21 = smov 0  }
   0x2   :  { %s1708_s22 = smov 0  }
   0x3 LB: > { %s30_s23 = sadd.s32 1, %s1658_s20  ;;  %s34_s24 = sadd.s32 1, %s1662_s21  ;;  %s1666_s22 = sphi %s1708_s22, %s15_s22   ;;  %s1662_s21 = sphi %s1706_s21, %s2300_s21   ;;  %s1658_s20 = sphi %s1704_s20, %s2299_s20   ;;  %s1654_s19 = sphi %s1702_s19, %s2298_s19   ;;  %s1650_s18 = sphi %s1700_s18, %s2297_s18  }
   0x4   : > { %p32_p0 = scmp.ge.s32.totalorder %s30_s23, 2  ;;  %p1468_p1 = scmp.ge.s32.totalorder %s1666_s22, 1 }
   0x5   : > { %p258_p2 = scmp.lt.s32.totalorder %s1666_s22, 5 }
   0x6   : > { %s2302_s23 = smov (%p32_p0, %s30_s23), 0  ;;  %s2304_s24 = smov (!%p32_p0, %s34_s24), %s1662_s21 }
   0x7   : > { %p259_p3 = pnand %p1468_p1, %p258_p2  ;;  %p36_p4 = scmp.ge.s32.totalorder %s2304_s24, 2 }
   0x8   : > { %p309_p5 = scmp.eq.s32.totalorder (!%p259_p3), %s1654_s19, 0  ;;  %p1475_p8 = scmp.ne.s32.totalorder (!%p259_p3), %s1654_s19, 0 }
   0x9   : > { %s2306_s24 = smov (%p36_p4, %s2304_s24), 0  ;;  %262 = sbr.rel (%p259_p3) target bundleno = 734 (0x2de), region = 40 }
  0x10   : > { %s310_s25 = scalar_select %p309_p5, %s1650_s18, 1 }
  0x11   : > { %s324_s26 = scalar_select %p309_p5, 0, %s1650_s18 }
  0x12   : > { %p312_p6 = scmp.lt.s32.totalorder %s310_s25, 1  ;;  %356 = sbr.rel (%p1475_p8) target bundleno = 536 (0x218), region = 44 }
  0x13   : > { %p326_p7 = scmp.lt.s32.totalorder %s324_s26, 1  ;;  %p357_p9 = scmp.eq.s32.totalorder (!%p1475_p8), %s1650_s18, 0 }
  0x14   : > { %s2308_s25 = smov (!%p312_p6, %s310_s25), 1 }
  0x15   : > { %s2310_s26 = smov (!%p326_p7, %s324_s26), 1  ;;  %s1483_s27 = sshll.u32 %s2308_s25, 7 }
  0x16   : > { %s1740_s30 = scalar_lea.vmem %s2291_s0, %s1483_s27  ;;  %s1484_s6 = sshll.u32 %s2310_s26, 7 }
  0x17   : > { %s1745_s9 = scalar_lea.vmem %s2295_s4, %s1484_s6  ;;  %s1750_s12 = scalar_lea.vmem %s2296_s5, %s1484_s6 }
  0x19   : > { %362 = sbr.rel (!%p357_p9) target bundleno = 42 (0x2a), region = 48  ;;  %vm363_vm0 = vcmask (%p357_p9), 7168   ;;  %v1668_v0 = vmov (%p357_p9), 0.0  }
  0x1a   : > { %364 = vst.msk [vmem:[#allocation3] sm:$0xff] (%p357_p9), %vm363_vm0, %v1668_v0  ;;  %365 = vst.msk [vmem:[#allocation3 + $0x8] sm:$0xff] (%p357_p9), %vm363_vm0, %v1668_v0 }
  0x1b   : > { %366 = vst.msk [vmem:[#allocation3 + $0x10] sm:$0xff] (%p357_p9), %vm363_vm0, %v1668_v0  ;;  %367 = vst.msk [vmem:[#allocation3 + $0x18] sm:$0xff] (%p357_p9), %vm363_vm0, %v1668_v0 }
  0x1c   : > { %368 = vst.msk [vmem:[#allocation3 + $0x20] sm:$0xff] (%p357_p9), %vm363_vm0, %v1668_v0  ;;  %369 = vst.msk [vmem:[#allocation3 + $0x28] sm:$0xff] (%p357_p9), %vm363_vm0, %v1668_v0 }
  0x1d   : > { %370 = vst.msk [vmem:[#allocation3 + $0x30] sm:$0xff] (%p357_p9), %vm363_vm0, %v1668_v0  ;;  %371 = vst.msk [vmem:[#allocation3 + $0x38] sm:$0xff] (%p357_p9), %vm363_vm0, %v1668_v0 }
  0x1e   : > { %372 = vst.msk [vmem:[#allocation3 + $0x40] sm:$0xff] (%p357_p9), %vm363_vm0, %v1668_v0  ;;  %373 = vst.msk [vmem:[#allocation3 + $0x48] sm:$0xff] (%p357_p9), %vm363_vm0, %v1668_v0 }
  0x1f   : > { %374 = vst.msk [vmem:[#allocation3 + $0x50] sm:$0xff] (%p357_p9), %vm363_vm0, %v1668_v0  ;;  %375 = vst.msk [vmem:[#allocation3 + $0x58] sm:$0xff] (%p357_p9), %vm363_vm0, %v1668_v0 }
  0x20   : > { %376 = vst.msk [vmem:[#allocation3 + $0x60] sm:$0xff] %vm363_vm0, %v1668_v0  ;;  %377 = vst.msk [vmem:[#allocation3 + $0x68] sm:$0xff] %vm363_vm0, %v1668_v0 }
  0x21   : > { %378 = vst.msk [vmem:[#allocation3 + $0x70] sm:$0xff] %vm363_vm0, %v1668_v0  ;;  %379 = vst.msk [vmem:[#allocation3 + $0x78] sm:$0xff] %vm363_vm0, %v1668_v0 }
  0x22   : > { %380 = vst.msk [vmem:[#allocation4] sm:$0xff] %vm363_vm0, %v1668_v0  ;;  %381 = vst.msk [vmem:[#allocation4 + $0x8] sm:$0xff] %vm363_vm0, %v1668_v0 }
  0x23   : > { %382 = vst.msk [vmem:[#allocation4 + $0x10] sm:$0xff] %vm363_vm0, %v1668_v0  ;;  %383 = vst.msk [vmem:[#allocation4 + $0x18] sm:$0xff] %vm363_vm0, %v1668_v0 }
  0x24   : > { %384 = vst.msk [vmem:[#allocation4 + $0x20] sm:$0xff] %vm363_vm0, %v1668_v0  ;;  %385 = vst.msk [vmem:[#allocation4 + $0x28] sm:$0xff] %vm363_vm0, %v1668_v0 }
  0x25   : > { %386 = vst.msk [vmem:[#allocation4 + $0x30] sm:$0xff] %vm363_vm0, %v1668_v0  ;;  %387 = vst.msk [vmem:[#allocation4 + $0x38] sm:$0xff] %vm363_vm0, %v1668_v0 }
  0x26   : > { %388 = vst.msk [vmem:[#allocation4 + $0x40] sm:$0xff] %vm363_vm0, %v1668_v0  ;;  %389 = vst.msk [vmem:[#allocation4 + $0x48] sm:$0xff] %vm363_vm0, %v1668_v0 }
  0x27   : > { %390 = vst.msk [vmem:[#allocation4 + $0x50] sm:$0xff] %vm363_vm0, %v1668_v0  ;;  %391 = vst.msk [vmem:[#allocation4 + $0x58] sm:$0xff] %vm363_vm0, %v1668_v0 }
  0x28   : > { %392 = vst.msk [vmem:[#allocation4 + $0x60] sm:$0xff] %vm363_vm0, %v1668_v0  ;;  %393 = vst.msk [vmem:[#allocation4 + $0x68] sm:$0xff] %vm363_vm0, %v1668_v0 }
  0x29   : > { %394 = vst.msk [vmem:[#allocation4 + $0x70] sm:$0xff] %vm363_vm0, %v1668_v0  ;;  %395 = vst.msk [vmem:[#allocation4 + $0x78] sm:$0xff] %vm363_vm0, %v1668_v0 }
  0x2a PF: > { %v420_v1 = vld [vmem:[%s1740_s30] sm:$0xff]  ;;  %v421_v2 = vld [vmem:[%s1740_s30 + $0x8] sm:$0xff]  ;;  %v422_v3 = vld [vmem:[%s1740_s30 + $0x10] sm:$0xff]  ;;  %s1477_s13 = sshll.u32 %s1650_s18, 7  ;;  %vm543_vm1 = vcmask 523264   ;;  %p769_p10 = scmp.eq.s32.totalorder %s1650_s18, 1 }
  0x2b   : > { %v436_v4 = vpack.c.bf16 %v421_v2, %v420_v1  ;;  %v423_v5 = vld [vmem:[%s1740_s30 + $0x18] sm:$0xff]  ;;  %v424_v7 = vld [vmem:[%s1740_s30 + $0x20] sm:$0xff]  ;;  %v425_v8 = vld [vmem:[%s1740_s30 + $0x28] sm:$0xff]  ;;  %s1851_s14 = scalar_lea.vmem [#allocation2], %s1477_s13  ;;  %vm640_vm2 = vcmask 7168  }
  0x2c   : > { %v437_v6 = vpack.c.bf16 %v423_v5, %v422_v3  ;;  %v438_v9 = vpack.c.bf16 %v425_v8, %v424_v7  ;;  %v426_v10 = vld [vmem:[%s1740_s30 + $0x30] sm:$0xff]  ;;  %v396_v11 = vld [vmem:[%s2292_s1] sm:$0xff]  ;;  %v397_v12 = vld [vmem:[%s2292_s1 + $0x8] sm:$0xff] }
  0x2d   : > { %1504 = vmatprep.subr.bf16.mxu0 %v436_v4  ;;  %1536 = vmatprep.subr.bf16.mxu1 %v436_v4  ;;  %v427_v13 = vld [vmem:[%s1740_s30 + $0x38] sm:$0xff]  ;;  %v412_v14 = vpack.c.bf16 %v397_v12, %v396_v11  ;;  %v404_v15 = vld [vmem:[%s2292_s1 + $0x40] sm:$0xff]  ;;  %v405_v16 = vld [vmem:[%s2292_s1 + $0x48] sm:$0xff] }
  0x2e   : > { %1505 = vmatpush3.bf16.msra.mxu0 %v436_v4  ;;  %1544 = vmatpush3.bf16.msra.mxu1 %v436_v4  ;;  %v416_v17 = vpack.c.bf16 %v405_v16, %v404_v15  ;;  %v439_v18 = vpack.c.bf16 %v427_v13, %v426_v10  ;;  %v428_v19 = vld [vmem:[%s1740_s30 + $0x40] sm:$0xff]  ;;  %v429_v20 = vld [vmem:[%s1740_s30 + $0x48] sm:$0xff]  ;;  %v430_v22 = vld [vmem:[%s1740_s30 + $0x50] sm:$0xff] }
  0x2f   : > { %1506 = vmatprep.subr.bf16.mxu0 %v437_v6  ;;  %1537 = vmatprep.subr.bf16.mxu1 %v437_v6  ;;  %v440_v21 = vpack.c.bf16 %v429_v20, %v428_v19  ;;  %v431_v23 = vld [vmem:[%s1740_s30 + $0x58] sm:$0xff]  ;;  %v432_v25 = vld [vmem:[%s1740_s30 + $0x60] sm:$0xff]  ;;  %v433_v26 = vld [vmem:[%s1740_s30 + $0x68] sm:$0xff] }
  0x30   : > { %1520 = vmatprep.mubr.bf16.mxu0 %v412_v14  ;;  %1528 = vmatprep.mubr.bf16.mxu1 %v416_v17  ;;  %v441_v24 = vpack.c.bf16 %v431_v23, %v430_v22  ;;  %v442_v27 = vpack.c.bf16 %v433_v26, %v432_v25  ;;  %v434_v28 = vld [vmem:[%s1740_s30 + $0x70] sm:$0xff]  ;;  %v435_v29 = vld [vmem:[%s1740_s30 + $0x78] sm:$0xff]  ;;  %v400_v35 = vld [vmem:[%s2292_s1 + $0x20] sm:$0xff] }
  0x31   : > { %v443_v30 = vpack.c.bf16 %v435_v29, %v434_v28  ;;  %v398_v31 = vld [vmem:[%s2292_s1 + $0x10] sm:$0xff]  ;;  %v399_v32 = vld [vmem:[%s2292_s1 + $0x18] sm:$0xff]  ;;  %v401_v36 = vld [vmem:[%s2292_s1 + $0x28] sm:$0xff] }
  0x32   : > { %1507 = vmatpush3.bf16.msra.mxu0 %v437_v6  ;;  %1545 = vmatpush3.bf16.msra.mxu1 %v437_v6  ;;  %v406_v33 = vld [vmem:[%s2292_s1 + $0x50] sm:$0xff]  ;;  %v407_v34 = vld [vmem:[%s2292_s1 + $0x58] sm:$0xff]  ;;  %v408_v37 = vld [vmem:[%s2292_s1 + $0x60] sm:$0xff]  ;;  %v413_v39 = vpack.c.bf16 %v399_v32, %v398_v31  ;;  %v414_v41 = vpack.c.bf16 %v401_v36, %v400_v35 }
  0x33   : > { %1508 = vmatprep.subr.bf16.mxu0 %v438_v9  ;;  %1538 = vmatprep.subr.bf16.mxu1 %v438_v9  ;;  %v409_v38 = vld [vmem:[%s2292_s1 + $0x68] sm:$0xff]  ;;  %v417_v40 = vpack.c.bf16 %v407_v34, %v406_v33  ;;  %v402_v43 = vld [vmem:[%s2292_s1 + $0x30] sm:$0xff]  ;;  %v403_v44 = vld [vmem:[%s2292_s1 + $0x38] sm:$0xff] }
  0x34   : > { %v418_v42 = vpack.c.bf16 %v409_v38, %v408_v37  ;;  %v410_v45 = vld [vmem:[%s2292_s1 + $0x70] sm:$0xff]  ;;  %v411_v46 = vld [vmem:[%s2292_s1 + $0x78] sm:$0xff]  ;;  %v415_v47 = vpack.c.bf16 %v403_v44, %v402_v43 }
  0x35   : > { %v419_v48 = vpack.c.bf16 %v411_v46, %v410_v45 }
  0x36   : > { %1509 = vmatpush3.bf16.msra.mxu0 %v438_v9  ;;  %1546 = vmatpush3.bf16.msra.mxu1 %v438_v9 }
  0x37   : > { %1510 = vmatprep.subr.bf16.mxu0 %v439_v18  ;;  %1539 = vmatprep.subr.bf16.mxu1 %v439_v18 }
  0x3a   : > { %1511 = vmatpush3.bf16.msra.mxu0 %v439_v18  ;;  %1547 = vmatpush3.bf16.msra.mxu1 %v439_v18 }
  0x3b   : > { %1512 = vmatprep.subr.bf16.mxu0 %v440_v21  ;;  %1540 = vmatprep.subr.bf16.mxu1 %v440_v21 }
  0x3e   : > { %1513 = vmatpush3.bf16.msra.mxu0 %v440_v21  ;;  %1548 = vmatpush3.bf16.msra.mxu1 %v440_v21 }
  0x3f   : > { %1514 = vmatprep.subr.bf16.mxu0 %v441_v24  ;;  %1541 = vmatprep.subr.bf16.mxu1 %v441_v24 }
  0x42   : > { %1515 = vmatpush3.bf16.msra.mxu0 %v441_v24  ;;  %1549 = vmatpush3.bf16.msra.mxu1 %v441_v24 }
  0x43   : > { %1516 = vmatprep.subr.bf16.mxu0 %v442_v27  ;;  %1542 = vmatprep.subr.bf16.mxu1 %v442_v27 }
  0x46   : > { %1517 = vmatpush3.bf16.msra.mxu0 %v442_v27  ;;  %1550 = vmatpush3.bf16.msra.mxu1 %v442_v27 }
  0x47   : > { %1518 = vmatprep.subr.bf16.mxu0 %v443_v30  ;;  %1543 = vmatprep.subr.bf16.mxu1 %v443_v30 }
  0x4a   : > { %1519 = vmatpush3.bf16.msra.mxu0 %v443_v30  ;;  %1551 = vmatpush3.bf16.msra.mxu1 %v443_v30 }
  0x4d   : > { %1521 = vmatmul.mubr.bf16.vlgmr.msra.gmra.mrb[0].mxu0 %v413_v39  ;;  %1529 = vmatmul.mubr.bf16.vlgmr.msra.gmra.mrb[0].mxu1 %v417_v40 }
  0x4e   : > { %1524 = vmatprep.mubr.bf16.mxu0 %v414_v41  ;;  %1532 = vmatprep.mubr.bf16.mxu1 %v418_v42 }
  0x55   : > { %1525 = vmatmul.mubr.bf16.gmra.mrb[4].mxu0 %v415_v47  ;;  %1533 = vmatmul.mubr.bf16.gmra.mrb[4].mxu1 %v419_v48 }
 0x120   : > { %v1522_v49 = vpop.f32.mrb[0].mxu0  ;;  %v1530_v50 = vpop.f32.mrb[0].mxu1 }
 0x121   : > { %546 = vst.msk [vmem:[%s1851_s14 + $0x10] sm:$0xff] %vm543_vm1, %v1522_v49  ;;  %554 = vst.msk [vmem:[%s1851_s14 + $0x50] sm:$0xff] %vm543_vm1, %v1530_v50  ;;  %v478_v51 = vpop.f32.mrb[1].mxu0  ;;  %v510_v52 = vpop.f32.mrb[1].mxu1  ;;  %v606_v53 = vsel %vm543_vm1, %v1530_v50, 0.0  ;;  %v582_v54 = vsel %vm543_vm1, %v1522_v49, 0.0  ;;  %v675_v1 = vmul.f32 %v1522_v49, %v1522_v49  ;;  %v683_v10 = vmul.f32 %v1530_v50, %v1530_v50 }
 0x122   : > { %544 = vst.msk [vmem:[%s1851_s14] sm:$0xff] %vm543_vm1, %v478_v51  ;;  %552 = vst.msk [vmem:[%s1851_s14 + $0x40] sm:$0xff] %vm543_vm1, %v510_v52  ;;  %607 = vadd.xlane.f32.xlu0 %v606_v53  ;;  %v1531_v55 = vpop.f32.mrb[2].mxu1  ;;  %583 = vadd.xlane.f32.xlu1 %v582_v54  ;;  %v1523_v56 = vpop.f32.mrb[2].mxu0  ;;  %v576_v59 = vsel %vm543_vm1, %v478_v51, 0.0  ;;  %v600_v63 = vsel %vm543_vm1, %v510_v52, 0.0  ;;  %v673_v18 = vmul.f32 %v478_v51, %v478_v51 }
 0x123   : > { %555 = vst.msk [vmem:[%s1851_s14 + $0x58] sm:$0xff] %vm543_vm1, %v1531_v55  ;;  %547 = vst.msk [vmem:[%s1851_s14 + $0x18] sm:$0xff] %vm543_vm1, %v1523_v56  ;;  %v481_v57 = vpop.f32.mrb[3].mxu0  ;;  %v513_v58 = vpop.f32.mrb[3].mxu1  ;;  %v585_v60 = vsel %vm543_vm1, %v1523_v56, 0.0  ;;  %v609_v0 = vsel %vm543_vm1, %v1531_v55, 0.0  ;;  %v676_v11 = vmul.f32 %v1523_v56, %v1523_v56  ;;  %v684_v14 = vmul.f32 %v1531_v55, %v1531_v55 }
 0x124   : > { %545 = vst.msk [vmem:[%s1851_s14 + $0x8] sm:$0xff] %vm543_vm1, %v481_v57  ;;  %553 = vst.msk [vmem:[%s1851_s14 + $0x48] sm:$0xff] %vm543_vm1, %v513_v58  ;;  %v695_v8 = vsel %vm543_vm1, %v675_v1, 0.0  ;;  %v603_v9 = vsel %vm543_vm1, %v513_v58, 0.0  ;;  %v719_v12 = vsel %vm543_vm1, %v683_v10, 0.0  ;;  %v579_v16 = vsel %vm543_vm1, %v481_v57, 0.0 }
 0x125   : > { %v698_v13 = vsel %vm543_vm1, %v676_v11, 0.0  ;;  %v722_v15 = vsel %vm543_vm1, %v684_v14, 0.0  ;;  %v674_v17 = vmul.f32 %v481_v57, %v481_v57  ;;  %v689_v20 = vsel %vm543_vm1, %v673_v18, 0.0  ;;  %v570_v49 = vld [vmem:[#allocation3 + $0x50] sm:$0xff]  ;;  %v560_v55 = vld [vmem:[#allocation3] sm:$0xff]  ;;  %v563_v56 = vld [vmem:[#allocation3 + $0x18] sm:$0xff] }
 0x126   : > { %577 = vadd.xlane.f32.xlu0 %v576_v59  ;;  %586 = vadd.xlane.f32.xlu1 %v585_v60  ;;  %v682_v21 = vmul.f32 %v513_v58, %v513_v58  ;;  %v681_v22 = vmul.f32 %v510_v52, %v510_v52  ;;  %v562_v50 = vld [vmem:[#allocation3 + $0x10] sm:$0xff]  ;;  %v660_v10 = vld [vmem:[#allocation4 + $0x18] sm:$0xff] }
 0x127   : > { %v692_v19 = vsel %vm543_vm1, %v674_v17, 0.0 }
 0x128   : > { %v1526_v61 = vpop.f32.mrb[4].mxu0  ;;  %v1873_v62 = vpop.f32.mrb[4].mxu1  ;;  %v716_v23 = vsel %vm543_vm1, %v682_v21, 0.0  ;;  %v713_v24 = vsel %vm543_vm1, %v681_v22, 0.0  ;;  %v658_v21 = vld [vmem:[#allocation4 + $0x8] sm:$0xff]  ;;  %v657_v22 = vld [vmem:[#allocation4] sm:$0xff] }
 0x129   : > { %550 = vst.msk [vmem:[%s1851_s14 + $0x30] sm:$0xff] %vm543_vm1, %v1526_v61  ;;  %v1879_v2 = vpop.f32.mrb[5].mxu0  ;;  %558 = vst.msk [vmem:[%s1851_s14 + $0x70] sm:$0xff] %vm543_vm1, %v1873_v62  ;;  %v1884_v3 = vpop.f32.mrb[5].mxu1  ;;  %v594_v25 = vsel %vm543_vm1, %v1526_v61, 0.0  ;;  %v618_v27 = vsel %vm543_vm1, %v1873_v62, 0.0  ;;  %v679_v33 = vmul.f32 %v1526_v61, %v1526_v61  ;;  %v687_v45 = vmul.f32 %v1873_v62, %v1873_v62 }
 0x12a   : > { %601 = vadd.xlane.f32.xlu0 %v600_v63  ;;  %610 = vadd.xlane.f32.xlu1 %v609_v0  ;;  %548 = vst.msk [vmem:[%s1851_s14 + $0x20] sm:$0xff] %vm543_vm1, %v1879_v2  ;;  %v1527_v4 = vpop.f32.mrb[6].mxu0  ;;  %556 = vst.msk [vmem:[%s1851_s14 + $0x60] sm:$0xff] %vm543_vm1, %v1884_v3  ;;  %v1892_v5 = vpop.f32.mrb[6].mxu1  ;;  %v588_v29 = vsel %vm543_vm1, %v1879_v2, 0.0  ;;  %v612_v31 = vsel %vm543_vm1, %v1884_v3, 0.0  ;;  %v677_v38 = vmul.f32 %v1879_v2, %v1879_v2 }
 0x12b   : > { %551 = vst.msk [vmem:[%s1851_s14 + $0x38] sm:$0xff] %vm543_vm1, %v1527_v4  ;;  %v497_v6 = vpop.f32.mrb[7].mxu0  ;;  %559 = vst.msk [vmem:[%s1851_s14 + $0x78] sm:$0xff] %vm543_vm1, %v1892_v5  ;;  %v529_v7 = vpop.f32.mrb[7].mxu1  ;;  %v597_v26 = vsel %vm543_vm1, %v1527_v4, 0.0  ;;  %v621_v28 = vsel %vm543_vm1, %v1892_v5, 0.0  ;;  %v680_v34 = vmul.f32 %v1527_v4, %v1527_v4  ;;  %v685_v42 = vmul.f32 %v1884_v3, %v1884_v3 }
 0x12c   : > { %549 = vst.msk [vmem:[%s1851_s14 + $0x28] sm:$0xff] %vm543_vm1, %v497_v6  ;;  %557 = vst.msk [vmem:[%s1851_s14 + $0x68] sm:$0xff] %vm543_vm1, %v529_v7  ;;  %v591_v30 = vsel %vm543_vm1, %v497_v6, 0.0  ;;  %v615_v32 = vsel %vm543_vm1, %v529_v7, 0.0  ;;  %v678_v35 = vmul.f32 %v497_v6, %v497_v6  ;;  %v707_v36 = vsel %vm543_vm1, %v679_v33, 0.0  ;;  %v568_v61 = vld [vmem:[#allocation3 + $0x40] sm:$0xff] }
 0x12d   : > { %v710_v37 = vsel %vm543_vm1, %v680_v34, 0.0  ;;  %v686_v39 = vmul.f32 %v529_v7, %v529_v7  ;;  %v701_v40 = vsel %vm543_vm1, %v677_v38, 0.0  ;;  %v725_v43 = vsel %vm543_vm1, %v685_v42, 0.0  ;;  %v571_v62 = vld [vmem:[#allocation3 + $0x58] sm:$0xff]  ;;  %v659_v3 = vld [vmem:[#allocation4 + $0x10] sm:$0xff]  ;;  %v569_v4 = vld [vmem:[#allocation3 + $0x48] sm:$0xff] }
 0x12e   : > { %696 = vadd.xlane.f32.xlu0 %v695_v8  ;;  %604 = vadd.xlane.f32.xlu1 %v603_v9  ;;  %v704_v41 = vsel %vm543_vm1, %v678_v35, 0.0  ;;  %v688_v46 = vmul.f32 %v1892_v5, %v1892_v5  ;;  %v731_v47 = vsel %vm543_vm1, %v687_v45, 0.0  ;;  %v667_v9 = vld [vmem:[#allocation4 + $0x50] sm:$0xff]  ;;  %v567_v34 = vld [vmem:[#allocation3 + $0x38] sm:$0xff]  ;;  %v564_v45 = vld [vmem:[#allocation3 + $0x20] sm:$0xff] }
 0x12f   : > { %v728_v44 = vsel %vm543_vm1, %v686_v39, 0.0  ;;  %v566_v33 = vld [vmem:[#allocation3 + $0x30] sm:$0xff] }
 0x130   : > { %v734_v48 = vsel %vm543_vm1, %v688_v46, 0.0  ;;  %v574_v39 = vld [vmem:[#allocation3 + $0x70] sm:$0xff]  ;;  %v565_v46 = vld [vmem:[#allocation3 + $0x28] sm:$0xff] }
 0x132   : > { %720 = vadd.xlane.f32.xlu0 %v719_v12  ;;  %699 = vadd.xlane.f32.xlu1 %v698_v13 }
 0x136   : > { %723 = vadd.xlane.f32.xlu1 %v722_v15  ;;  %580 = vadd.xlane.f32.xlu0 %v579_v16  ;;  %v668_v15 = vld [vmem:[#allocation4 + $0x58] sm:$0xff]  ;;  %v561_v16 = vld [vmem:[#allocation3 + $0x8] sm:$0xff] }
 0x13a   : > { %693 = vadd.xlane.f32.xlu1 %v692_v19  ;;  %690 = vadd.xlane.f32.xlu0 %v689_v20 }
 0x13e   : > { %717 = vadd.xlane.f32.xlu1 %v716_v23  ;;  %714 = vadd.xlane.f32.xlu0 %v713_v24 }
 0x142   : > { %595 = vadd.xlane.f32.xlu0 %v594_v25  ;;  %598 = vadd.xlane.f32.xlu1 %v597_v26 }
 0x146   : > { %619 = vadd.xlane.f32.xlu0 %v618_v27  ;;  %622 = vadd.xlane.f32.xlu1 %v621_v28  ;;  %v666_v27 = vld [vmem:[#allocation4 + $0x48] sm:$0xff]  ;;  %v665_v28 = vld [vmem:[#allocation4 + $0x40] sm:$0xff] }
 0x14a   : > { %589 = vadd.xlane.f32.xlu0 %v588_v29  ;;  %592 = vadd.xlane.f32.xlu1 %v591_v30 }
 0x14e   : > { %613 = vadd.xlane.f32.xlu0 %v612_v31  ;;  %616 = vadd.xlane.f32.xlu1 %v615_v32 }
 0x152   : > { %708 = vadd.xlane.f32.xlu0 %v707_v36  ;;  %711 = vadd.xlane.f32.xlu1 %v710_v37 }
 0x156   : > { %702 = vadd.xlane.f32.xlu0 %v701_v40  ;;  %705 = vadd.xlane.f32.xlu1 %v704_v41  ;;  %v575_v40 = vld [vmem:[#allocation3 + $0x78] sm:$0xff] }
 0x15a   : > { %726 = vadd.xlane.f32.xlu0 %v725_v43  ;;  %729 = vadd.xlane.f32.xlu1 %v728_v44 }
 0x15e   : > { %732 = vadd.xlane.f32.xlu0 %v731_v47  ;;  %735 = vadd.xlane.f32.xlu1 %v734_v48 }
 0x1af   : > { %v608_v51 = vpop.xlane.xlu0 %607  ;;  %v584_v52 = vpop.xlane.xlu1 %583 }
 0x1b0   : > { %v634_v53 = vadd.f32 %v608_v51, %v570_v49  ;;  %v626_v54 = vadd.f32 %v584_v52, %v562_v50  ;;  %v572_v51 = vld [vmem:[#allocation3 + $0x60] sm:$0xff]  ;;  %v573_v52 = vld [vmem:[#allocation3 + $0x68] sm:$0xff] }
 0x1b2   : > { %651 = vst.msk [vmem:[#allocation3 + $0x50] sm:$0xff] %vm640_vm2, %v634_v53  ;;  %643 = vst.msk [vmem:[#allocation3 + $0x10] sm:$0xff] %vm640_vm2, %v626_v54 }
 0x1b3   : > { %v578_v57 = vpop.xlane.xlu0 %577  ;;  %v587_v58 = vpop.xlane.xlu1 %586 }
 0x1b4   : > { %v624_v59 = vadd.f32 %v578_v57, %v560_v55  ;;  %v627_v60 = vadd.f32 %v587_v58, %v563_v56  ;;  %v663_v57 = vld [vmem:[#allocation4 + $0x30] sm:$0xff]  ;;  %v664_v58 = vld [vmem:[#allocation4 + $0x38] sm:$0xff] }
 0x1b6   : > { %641 = vst.msk [vmem:[#allocation3] sm:$0xff] %vm640_vm2, %v624_v59  ;;  %644 = vst.msk [vmem:[#allocation3 + $0x18] sm:$0xff] %vm640_vm2, %v627_v60 }
 0x1b7   : > { %v602_v63 = vpop.xlane.xlu0 %601  ;;  %v611_v0 = vpop.xlane.xlu1 %610 }
 0x1b8   : > { %v632_v1 = vadd.f32 %v602_v63, %v568_v61  ;;  %v635_v2 = vadd.f32 %v611_v0, %v571_v62  ;;  %v661_v63 = vld [vmem:[#allocation4 + $0x20] sm:$0xff]  ;;  %v662_v0 = vld [vmem:[#allocation4 + $0x28] sm:$0xff] }
 0x1ba   : > { %649 = vst.msk [vmem:[#allocation3 + $0x40] sm:$0xff] %vm640_vm2, %v632_v1  ;;  %652 = vst.msk [vmem:[#allocation3 + $0x58] sm:$0xff] %vm640_vm2, %v635_v2 }
 0x1bb   : > { %v697_v5 = vpop.xlane.xlu0 %696  ;;  %v605_v6 = vpop.xlane.xlu1 %604 }
 0x1bc   : > { %v739_v7 = vadd.f32 %v697_v5, %v659_v3  ;;  %v633_v8 = vadd.f32 %v605_v6, %v569_v4  ;;  %v669_v5 = vld [vmem:[#allocation4 + $0x60] sm:$0xff]  ;;  %v670_v6 = vld [vmem:[#allocation4 + $0x68] sm:$0xff] }
 0x1be   : > { %755 = vst.msk [vmem:[#allocation4 + $0x10] sm:$0xff] %vm640_vm2, %v739_v7  ;;  %650 = vst.msk [vmem:[#allocation3 + $0x48] sm:$0xff] %vm640_vm2, %v633_v8 }
 0x1bf   : > { %v721_v11 = vpop.xlane.xlu0 %720  ;;  %v700_v12 = vpop.xlane.xlu1 %699 }
 0x1c0   : > { %v747_v13 = vadd.f32 %v721_v11, %v667_v9  ;;  %v740_v14 = vadd.f32 %v700_v12, %v660_v10  ;;  %v671_v11 = vld [vmem:[#allocation4 + $0x70] sm:$0xff]  ;;  %v672_v12 = vld [vmem:[#allocation4 + $0x78] sm:$0xff] }
 0x1c2   : > { %763 = vst.msk [vmem:[#allocation4 + $0x50] sm:$0xff] %vm640_vm2, %v747_v13  ;;  %756 = vst.msk [vmem:[#allocation4 + $0x18] sm:$0xff] %vm640_vm2, %v740_v14 }
 0x1c3   : > { %v724_v17 = vpop.xlane.xlu1 %723  ;;  %v581_v18 = vpop.xlane.xlu0 %580 }
 0x1c4   : > { %v748_v19 = vadd.f32 %v724_v17, %v668_v15  ;;  %v625_v20 = vadd.f32 %v581_v18, %v561_v16  ;;  %v774_v17 = vld [vmem:[#allocation3] sm:$0xff] (%p769_p10) }
 0x1c6   : > { %764 = vst.msk [vmem:[#allocation4 + $0x58] sm:$0xff] %vm640_vm2, %v748_v19  ;;  %642 = vst.msk [vmem:[#allocation3 + $0x8] sm:$0xff] %vm640_vm2, %v625_v20  ;;  %v1976_v19 = vmul.f32 (%p769_p10), 0.0078125, %v774_v17 }
 0x1c7   : > { %v694_v23 = vpop.xlane.xlu1 %693  ;;  %v691_v24 = vpop.xlane.xlu0 %690 }
 0x1c8   : > { %v738_v25 = vadd.f32 %v694_v23, %v658_v21  ;;  %v737_v26 = vadd.f32 %v691_v24, %v657_v22 }
 0x1ca   : > { %754 = vst.msk [vmem:[#allocation4 + $0x8] sm:$0xff] %vm640_vm2, %v738_v25  ;;  %753 = vst.msk [vmem:[#allocation4] sm:$0xff] %vm640_vm2, %v737_v26  ;;  %v776_v25 = vld [vmem:[#allocation3 + $0x10] sm:$0xff] (%p769_p10) }
 0x1cb   : > { %v718_v29 = vpop.xlane.xlu1 %717  ;;  %v715_v30 = vpop.xlane.xlu0 %714  ;;  %v808_v26 = vld [vmem:[#allocation4 + $0x10] sm:$0xff] (%p769_p10) }
 0x1cc   : > { %v746_v31 = vadd.f32 %v718_v29, %v666_v27  ;;  %v745_v32 = vadd.f32 %v715_v30, %v665_v28  ;;  %v838_v27 = vmul.f32 (%p769_p10), %v1976_v19, %v1976_v19  ;;  %v1982_v28 = vmul.f32 (%p769_p10), 0.0078125, %v776_v25  ;;  %v777_v30 = vld [vmem:[#allocation3 + $0x18] sm:$0xff] (%p769_p10) }
 0x1cd   : > { %v775_v21 = vld [vmem:[#allocation3 + $0x8] sm:$0xff] (%p769_p10)  ;;  %v824_v29 = vmul.f32 (%p769_p10), 0.0078125, %v808_v26  ;;  %v785_v26 = vld [vmem:[#allocation3 + $0x58] sm:$0xff] (%p769_p10) }
 0x1ce   : > { %762 = vst.msk [vmem:[#allocation4 + $0x48] sm:$0xff] %vm640_vm2, %v746_v31  ;;  %761 = vst.msk [vmem:[#allocation4 + $0x40] sm:$0xff] %vm640_vm2, %v745_v32  ;;  %v1978_v23 = vmul.f32 (%p769_p10), 0.0078125, %v775_v21  ;;  %v809_v31 = vld [vmem:[#allocation4 + $0x18] sm:$0xff] (%p769_p10)  ;;  %v816_v21 = vld [vmem:[#allocation4 + $0x50] sm:$0xff] (%p769_p10) }
 0x1cf   : > { %v596_v35 = vpop.xlane.xlu0 %595  ;;  %v599_v36 = vpop.xlane.xlu1 %598 }
 0x1d0   : > { %v630_v37 = vadd.f32 %v596_v35, %v566_v33  ;;  %v631_v38 = vadd.f32 %v599_v36, %v567_v34  ;;  %v839_v32 = vmul.f32 (%p769_p10), %v1978_v23, %v1978_v23  ;;  %v1986_v33 = vmul.f32 (%p769_p10), 0.0078125, %v777_v30 }
 0x1d1   : > { %v806_v18 = vld [vmem:[#allocation4] sm:$0xff] (%p769_p10)  ;;  %v807_v22 = vld [vmem:[#allocation4 + $0x8] sm:$0xff] (%p769_p10)  ;;  %v825_v34 = vmul.f32 (%p769_p10), 0.0078125, %v809_v31 }
 0x1d2   : > { %647 = vst.msk [vmem:[#allocation3 + $0x30] sm:$0xff] %vm640_vm2, %v630_v37  ;;  %648 = vst.msk [vmem:[#allocation3 + $0x38] sm:$0xff] %vm640_vm2, %v631_v38  ;;  %v822_v20 = vmul.f32 (%p769_p10), 0.0078125, %v806_v18  ;;  %v823_v24 = vmul.f32 (%p769_p10), 0.0078125, %v807_v22  ;;  %v840_v38 = vmul.f32 (%p769_p10), %v1982_v28, %v1982_v28 }
 0x1d3   : > { %v620_v41 = vpop.xlane.xlu0 %619  ;;  %v623_v42 = vpop.xlane.xlu1 %622 }
 0x1d4   : > { %v638_v43 = vadd.f32 %v620_v41, %v574_v39  ;;  %v639_v44 = vadd.f32 %v623_v42, %v575_v40  ;;  %v854_v37 = vsub.f32 (%p769_p10), %v822_v20, %v838_v27  ;;  %v817_v27 = vld [vmem:[#allocation4 + $0x58] sm:$0xff] (%p769_p10) }
 0x1d6   : > { %655 = vst.msk [vmem:[#allocation3 + $0x70] sm:$0xff] %vm640_vm2, %v638_v43  ;;  %656 = vst.msk [vmem:[#allocation3 + $0x78] sm:$0xff] %vm640_vm2, %v639_v44  ;;  %v855_v43 = vsub.f32 (%p769_p10), %v823_v24, %v839_v32  ;;  %v841_v44 = vmul.f32 (%p769_p10), %v1986_v33, %v1986_v33 }
 0x1d7   : > { %v590_v47 = vpop.xlane.xlu0 %589  ;;  %v593_v48 = vpop.xlane.xlu1 %592 }
 0x1d8   : > { %v628_v49 = vadd.f32 %v590_v47, %v564_v45  ;;  %v629_v50 = vadd.f32 %v593_v48, %v565_v46 }
 0x1d9   : > { %v780_v47 = vld [vmem:[#allocation3 + $0x30] sm:$0xff] (%p769_p10) }
 0x1da   : > { %645 = vst.msk [vmem:[#allocation3 + $0x20] sm:$0xff] %vm640_vm2, %v628_v49  ;;  %646 = vst.msk [vmem:[#allocation3 + $0x28] sm:$0xff] %vm640_vm2, %v629_v50  ;;  %v870_v49 = vmax.f32 (%p769_p10), %v854_v37, 0.0  ;;  %v856_v50 = vsub.f32 (%p769_p10), %v824_v29, %v840_v38  ;;  %v832_v37 = vmul.f32 (%p769_p10), 0.0078125, %v816_v21 }
 0x1db   : > { %v614_v53 = vpop.xlane.xlu0 %613  ;;  %v617_v54 = vpop.xlane.xlu1 %616 }
 0x1dc   : > { %v636_v55 = vadd.f32 %v614_v53, %v572_v51  ;;  %v637_v56 = vadd.f32 %v617_v54, %v573_v52  ;;  %v1998_v52 = vmul.f32 (%p769_p10), 0.0078125, %v780_v47  ;;  %v781_v53 = vld [vmem:[#allocation3 + $0x38] sm:$0xff] (%p769_p10)  ;;  %v871_v54 = vmax.f32 (%p769_p10), %v855_v43, 0.0 }
 0x1dd   : > { %v833_v43 = vmul.f32 (%p769_p10), 0.0078125, %v817_v27  ;;  %v789_v27 = vld [vmem:[#allocation3 + $0x78] sm:$0xff] (%p769_p10) }
 0x1de   : > { %653 = vst.msk [vmem:[#allocation3 + $0x60] sm:$0xff] %vm640_vm2, %v636_v55  ;;  %654 = vst.msk [vmem:[#allocation3 + $0x68] sm:$0xff] %vm640_vm2, %v637_v56  ;;  %v857_v55 = vsub.f32 (%p769_p10), %v825_v34, %v841_v44 }
 0x1df   : > { %v709_v59 = vpop.xlane.xlu0 %708  ;;  %v712_v60 = vpop.xlane.xlu1 %711 }
 0x1e0   : > { %v743_v61 = vadd.f32 %v709_v59, %v663_v57  ;;  %v744_v62 = vadd.f32 %v712_v60, %v664_v58  ;;  %v886_v58 = vadd.f32 (%p769_p10), 1e-05, %v870_v49  ;;  %v872_v59 = vmax.f32 (%p769_p10), %v856_v50, 0.0 }
 0x1e1   : > { %v778_v35 = vld [vmem:[#allocation3 + $0x20] sm:$0xff] (%p769_p10)  ;;  %v779_v41 = vld [vmem:[#allocation3 + $0x28] sm:$0xff] (%p769_p10) }
 0x1e2   : > { %759 = vst.msk [vmem:[#allocation4 + $0x30] sm:$0xff] %vm640_vm2, %v743_v61  ;;  %760 = vst.msk [vmem:[#allocation4 + $0x38] sm:$0xff] %vm640_vm2, %v744_v62  ;;  %v1990_v39 = vmul.f32 (%p769_p10), 0.0078125, %v778_v35  ;;  %v1994_v45 = vmul.f32 (%p769_p10), 0.0078125, %v779_v41  ;;  %v844_v61 = vmul.f32 (%p769_p10), %v1998_v52, %v1998_v52  ;;  %1594 = vrsqrt.f32 (%p769_p10), %v886_v58  ;;  %v920_v58 = vld [vmem:[%s2293_s2 + $0x10] sm:$0xff] (%p769_p10) }
 0x1e3   : > { %v703_v1 = vpop.xlane.xlu0 %702  ;;  %v706_v2 = vpop.xlane.xlu1 %705 }
 0x1e4   : > { %v741_v3 = vadd.f32 %v703_v1, %v661_v63  ;;  %v742_v4 = vadd.f32 %v706_v2, %v662_v0  ;;  %v842_v51 = vmul.f32 (%p769_p10), %v1990_v39, %v1990_v39  ;;  %v843_v56 = vmul.f32 (%p769_p10), %v1994_v45, %v1994_v45 }
 0x1e5   : > { %v887_v63 = vadd.f32 (%p769_p10), 1e-05, %v871_v54  ;;  %v873_v0 = vmax.f32 (%p769_p10), %v857_v55, 0.0  ;;  %v2004_v2 = vmul.f32 (%p769_p10), 0.0078125, %v781_v53  ;;  %v786_v32 = vld [vmem:[#allocation3 + $0x60] sm:$0xff] (%p769_p10)  ;;  %v787_v38 = vld [vmem:[#allocation3 + $0x68] sm:$0xff] (%p769_p10) }
 0x1e6   : > { %757 = vst.msk [vmem:[#allocation4 + $0x20] sm:$0xff] %vm640_vm2, %v741_v3  ;;  %758 = vst.msk [vmem:[#allocation4 + $0x28] sm:$0xff] %vm640_vm2, %v742_v4  ;;  %v888_v3 = vadd.f32 (%p769_p10), 1e-05, %v872_v59  ;;  %v2025_v49 = vmul.f32 (%p769_p10), 0.0078125, %v786_v32 }
 0x1e7   : > { %v727_v7 = vpop.xlane.xlu0 %726  ;;  %v730_v8 = vpop.xlane.xlu1 %729  ;;  %1596 = vrsqrt.f32 (%p769_p10), %v887_v63 }
 0x1e8   : > { %v749_v9 = vadd.f32 %v727_v7, %v669_v5  ;;  %v750_v10 = vadd.f32 %v730_v8, %v670_v6  ;;  %773 = sbr.rel (!%p769_p10) target bundleno = 536 (0x218), region = 52  ;;  %v782_v6 = vld [vmem:[#allocation3 + $0x40] sm:$0xff] (%p769_p10)  ;;  %v889_v8 = vadd.f32 (%p769_p10), 1e-05, %v873_v0  ;;  %1598 = vrsqrt.f32 (%p769_p10), %v888_v3  ;;  %v921_v0 = vld [vmem:[%s2293_s2 + $0x18] sm:$0xff] (%p769_p10) }
 0x1e9   : > { %v812_v48 = vld [vmem:[#allocation4 + $0x30] sm:$0xff] (%p769_p10)  ;;  %v813_v62 = vld [vmem:[#allocation4 + $0x38] sm:$0xff] (%p769_p10)  ;;  %v814_v7 = vld [vmem:[#allocation4 + $0x40] sm:$0xff] (%p769_p10)  ;;  %v2008_v18 = vmul.f32 (%p769_p10), 0.0078125, %v782_v6 }
 0x1ea   : > { %765 = vst.msk [vmem:[#allocation4 + $0x60] sm:$0xff] %vm640_vm2, %v749_v9  ;;  %766 = vst.msk [vmem:[#allocation4 + $0x68] sm:$0xff] %vm640_vm2, %v750_v10  ;;  %v828_v57 = vmul.f32 (%p769_p10), 0.0078125, %v812_v48  ;;  %v829_v10 = vmul.f32 (%p769_p10), 0.0078125, %v813_v62  ;;  %1600 = vrsqrt.f32 (%p769_p10), %v889_v8  ;;  %v830_v20 = vmul.f32 (%p769_p10), 0.0078125, %v814_v7  ;;  %v922_v7 = vld [vmem:[%s2293_s2 + $0x20] sm:$0xff] (%p769_p10) }
 0x1eb   : > { %v733_v13 = vpop.xlane.xlu0 %732  ;;  %v736_v14 = vpop.xlane.xlu1 %735  ;;  %v846_v29 = vmul.f32 (%p769_p10), %v2008_v18, %v2008_v18 }
 0x1ec   : > { %v751_v15 = vadd.f32 %v733_v13, %v671_v11  ;;  %v752_v16 = vadd.f32 %v736_v14, %v672_v12  ;;  %v860_v5 = vsub.f32 (%p769_p10), %v828_v57, %v844_v61  ;;  %v783_v11 = vld [vmem:[#allocation3 + $0x48] sm:$0xff] (%p769_p10)  ;;  %v845_v14 = vmul.f32 (%p769_p10), %v2004_v2, %v2004_v2  ;;  %v1595_v57 = vpop.eup (%p769_p10), %1594 }
 0x1ed   : > { %v810_v36 = vld [vmem:[#allocation4 + $0x20] sm:$0xff] (%p769_p10)  ;;  %v811_v42 = vld [vmem:[#allocation4 + $0x28] sm:$0xff] (%p769_p10)  ;;  %v2010_v25 = vmul.f32 (%p769_p10), 0.0078125, %v783_v11  ;;  %v788_v11 = vld [vmem:[#allocation3 + $0x70] sm:$0xff] (%p769_p10) }
 0x1ee   : > { %767 = vst.msk [vmem:[#allocation4 + $0x70] sm:$0xff] %vm640_vm2, %v751_v15  ;;  %768 = vst.msk [vmem:[#allocation4 + $0x78] sm:$0xff] %vm640_vm2, %v752_v16  ;;  %v826_v40 = vmul.f32 (%p769_p10), 0.0078125, %v810_v36  ;;  %v827_v46 = vmul.f32 (%p769_p10), 0.0078125, %v811_v42  ;;  %v876_v13 = vmax.f32 (%p769_p10), %v860_v5, 0.0  ;;  %v815_v15 = vld [vmem:[#allocation4 + $0x48] sm:$0xff] (%p769_p10)  ;;  %v861_v24 = vsub.f32 (%p769_p10), %v829_v10, %v845_v14 }
 0x1ef   : > { %v784_v16 = vld [vmem:[#allocation3 + $0x50] sm:$0xff]  ;;  %v831_v30 = vmul.f32 0.0078125, %v815_v15  ;;  %v847_v36 = vmul.f32 %v2010_v25, %v2010_v25  ;;  %v2020_v42 = vmul.f32 0.0078125, %v785_v26  ;;  %v923_v14 = vld [vmem:[%s2293_s2 + $0x28] sm:$0xff] }
 0x1f0   : > { %v858_v60 = vsub.f32 %v826_v40, %v842_v51  ;;  %v859_v1 = vsub.f32 %v827_v46, %v843_v56  ;;  %v892_v22 = vadd.f32 1e-05, %v876_v13  ;;  %v2014_v31 = vmul.f32 0.0078125, %v784_v16  ;;  %v918_v46 = vld [vmem:[%s2293_s2] sm:$0xff]  ;;  %v919_v51 = vld [vmem:[%s2293_s2 + $0x8] sm:$0xff] }
 0x1f1   : > { %v818_v34 = vld [vmem:[#allocation4 + $0x60] sm:$0xff]  ;;  %v877_v35 = vmax.f32 %v861_v24, 0.0  ;;  %v862_v40 = vsub.f32 %v830_v20, %v846_v29  ;;  %v819_v44 = vld [vmem:[#allocation4 + $0x68] sm:$0xff]  ;;  %v863_v48 = vsub.f32 %v831_v30, %v847_v36  ;;  %v849_v55 = vmul.f32 %v2020_v42, %v2020_v42  ;;  %v1597_v62 = vpop.eup %1596 }
 0x1f2   : > { %v874_v4 = vmax.f32 %v858_v60, 0.0  ;;  %v875_v9 = vmax.f32 %v859_v1, 0.0  ;;  %v848_v41 = vmul.f32 %v2014_v31, %v2014_v31  ;;  %v834_v50 = vmul.f32 0.0078125, %v818_v34  ;;  %v1599_v5 = vpop.eup %1598 }
 0x1f3   : > { %v893_v47 = vadd.f32 1e-05, %v877_v35  ;;  %v878_v53 = vmax.f32 %v862_v40, 0.0  ;;  %v2032_v56 = vmul.f32 0.0078125, %v787_v38  ;;  %v879_v59 = vmax.f32 %v863_v48, 0.0  ;;  %v925_v48 = vld [vmem:[%s2293_s2 + $0x38] sm:$0xff] }
 0x1f4   : > { %v890_v12 = vadd.f32 1e-05, %v874_v4  ;;  %v891_v17 = vadd.f32 1e-05, %v875_v9  ;;  %v864_v54 = vsub.f32 %v832_v37, %v848_v41  ;;  %v850_v60 = vmul.f32 %v2025_v49, %v2025_v49 }
 0x1f5   : > { %v835_v61 = vmul.f32 0.0078125, %v819_v44  ;;  %v934_v63 = vmul.f32 %v1595_v57, %v918_v46  ;;  %v894_v1 = vadd.f32 1e-05, %v878_v53  ;;  %v865_v4 = vsub.f32 %v833_v43, %v849_v55  ;;  %v821_v35 = vld [vmem:[#allocation4 + $0x78] sm:$0xff] }
 0x1f6   : > { %1602 = vrsqrt.f32 %v890_v12  ;;  %v880_v3 = vmax.f32 %v864_v54, 0.0  ;;  %v935_v6 = vmul.f32 %v1597_v62, %v919_v51  ;;  %v895_v8 = vadd.f32 1e-05, %v879_v59  ;;  %v1601_v12 = vpop.eup %1600  ;;  %v967_v54 = vld [vmem:[%s2294_s3 + $0x8] sm:$0xff]  ;;  %v968_v59 = vld [vmem:[%s2294_s3 + $0x10] sm:$0xff] }
 0x1f7   : > { %1604 = vrsqrt.f32 %v891_v17  ;;  %v866_v9 = vsub.f32 %v834_v50, %v850_v60  ;;  %v851_v10 = vmul.f32 %v2032_v56, %v2032_v56  ;;  %950 = vst.msk [vmem:[#allocation5] sm:$0xff] %vm640_vm2, %v934_v63  ;;  %v936_v13 = vmul.f32 %v1599_v5, %v920_v58  ;;  %v820_v17 = vld [vmem:[#allocation4 + $0x70] sm:$0xff] }
 0x1f8   : > { %1606 = vrsqrt.f32 %v892_v22  ;;  %v896_v15 = vadd.f32 1e-05, %v880_v3  ;;  %v881_v16 = vmax.f32 %v865_v4, 0.0  ;;  %951 = vst.msk [vmem:[#allocation5 + $0x8] sm:$0xff] %vm640_vm2, %v935_v6  ;;  %v937_v21 = vmul.f32 %v1601_v12, %v921_v0  ;;  %v924_v22 = vld [vmem:[%s2293_s2 + $0x30] sm:$0xff] }
 0x1f9   : > { %1608 = vrsqrt.f32 %v893_v47  ;;  %v882_v24 = vmax.f32 %v866_v9, 0.0  ;;  %v867_v26 = vsub.f32 %v835_v61, %v851_v10  ;;  %952 = vst.msk [vmem:[#allocation5 + $0x10] sm:$0xff] %vm640_vm2, %v936_v13  ;;  %v2056_v34 = vmul.f32 0.0078125, %v788_v11  ;;  %v966_v47 = vld [vmem:[%s2294_s3] sm:$0xff]  ;;  %v972_v10 = vld [vmem:[%s2294_s3 + $0x30] sm:$0xff] }
 0x1fa   : > { %1610 = vrsqrt.f32 %v894_v1  ;;  %v897_v32 = vadd.f32 1e-05, %v881_v16  ;;  %953 = vst.msk [vmem:[#allocation5 + $0x18] sm:$0xff] %vm640_vm2, %v937_v21  ;;  %v836_v41 = vmul.f32 0.0078125, %v820_v17  ;;  %v2062_v46 = vmul.f32 0.0078125, %v789_v27  ;;  %v970_v61 = vld [vmem:[%s2294_s3 + $0x20] sm:$0xff] }
 0x1fb   : > { %1612 = vrsqrt.f32 %v895_v8  ;;  %v898_v38 = vadd.f32 1e-05, %v882_v24  ;;  %v883_v40 = vmax.f32 %v867_v26, 0.0  ;;  %v852_v44 = vmul.f32 %v2056_v34, %v2056_v34  ;;  %v928_v12 = vld [vmem:[%s2293_s2 + $0x50] sm:$0xff] }
 0x1fc   : > { %1614 = vrsqrt.f32 %v896_v15  ;;  %v837_v51 = vmul.f32 0.0078125, %v821_v35  ;;  %v982_v53 = vmul.f32 %v934_v63, %v1976_v19  ;;  %v853_v57 = vmul.f32 %v2062_v46, %v2062_v46  ;;  %v969_v19 = vld [vmem:[%s2294_s3 + $0x18] sm:$0xff] }
 0x1fd   : > { %1616 = vrsqrt.f32 %v897_v32  ;;  %v899_v50 = vadd.f32 1e-05, %v883_v40  ;;  %v868_v55 = vsub.f32 %v836_v41, %v852_v44  ;;  %v983_v58 = vmul.f32 %v935_v6, %v1978_v23  ;;  %v971_v6 = vld [vmem:[%s2294_s3 + $0x28] sm:$0xff]  ;;  %v976_v40 = vld [vmem:[%s2294_s3 + $0x50] sm:$0xff] }
 0x1fe   : > { %1618 = vrsqrt.f32 %v898_v38  ;;  %v984_v60 = vmul.f32 %v936_v13, %v1982_v28  ;;  %v998_v63 = vsub.f32 %v966_v47, %v982_v53  ;;  %v985_v0 = vmul.f32 %v937_v21, %v1986_v33  ;;  %v926_v28 = vld [vmem:[%s2293_s2 + $0x40] sm:$0xff] }
 0x1ff   : > { %1620 = vrsqrt.f32 %v899_v50  ;;  %v884_v3 = vmax.f32 %v868_v55, 0.0  ;;  %v869_v4 = vsub.f32 %v837_v51, %v853_v57  ;;  %v999_v5 = vsub.f32 %v967_v54, %v983_v58  ;;  %v978_v55 = vld [vmem:[%s2294_s3 + $0x60] sm:$0xff] }
 0x200   : > { %v1603_v20 = vpop.eup %1602  ;;  %1014 = vst.msk [vmem:[#allocation6] sm:$0xff] %vm640_vm2, %v998_v63  ;;  %v1000_v33 = vsub.f32 %v968_v59, %v984_v60  ;;  %v979_v59 = vld [vmem:[%s2294_s3 + $0x68] sm:$0xff] }
 0x201   : > { %v1605_v29 = vpop.eup %1604  ;;  %v938_v30 = vmul.f32 %v1603_v20, %v922_v7  ;;  %v927_v7 = vld [vmem:[%s2293_s2 + $0x48] sm:$0xff]  ;;  %v900_v13 = vadd.f32 1e-05, %v884_v3  ;;  %1015 = vst.msk [vmem:[#allocation6 + $0x8] sm:$0xff] %vm640_vm2, %v999_v5 }
 0x202   : > { %v1607_v36 = vpop.eup %1606  ;;  %v939_v37 = vmul.f32 %v1605_v29, %v923_v14  ;;  %v885_v14 = vmax.f32 %v869_v4, 0.0  ;;  %1016 = vst.msk [vmem:[#allocation6 + $0x10] sm:$0xff] %vm640_vm2, %v1000_v33 }
 0x203   : > { %954 = vst.msk [vmem:[#allocation5 + $0x20] sm:$0xff] %vm640_vm2, %v938_v30  ;;  %v940_v43 = vmul.f32 %v1607_v36, %v924_v22  ;;  %v1609_v62 = vpop.eup %1608  ;;  %v986_v23 = vmul.f32 %v938_v30, %v1990_v39  ;;  %v1001_v39 = vsub.f32 %v969_v19, %v985_v0  ;;  %1622 = vrsqrt.f32 %v900_v13  ;;  %v930_v30 = vld [vmem:[%s2293_s2 + $0x60] sm:$0xff]  ;;  %v975_v36 = vld [vmem:[%s2294_s3 + $0x48] sm:$0xff] }
 0x204   : > { %955 = vst.msk [vmem:[#allocation5 + $0x28] sm:$0xff] %vm640_vm2, %v939_v37  ;;  %v941_v1 = vmul.f32 %v1609_v62, %v925_v48  ;;  %v987_v9 = vmul.f32 %v939_v37, %v1994_v45  ;;  %v1611_v11 = vpop.eup %1610  ;;  %v973_v45 = vld [vmem:[%s2294_s3 + $0x38] sm:$0xff]  ;;  %v901_v26 = vadd.f32 1e-05, %v885_v14 }
 0x205   : > { %956 = vst.msk [vmem:[#allocation5 + $0x30] sm:$0xff] %vm640_vm2, %v940_v43  ;;  %v1002_v8 = vsub.f32 %v970_v61, %v986_v23  ;;  %v988_v15 = vmul.f32 %v940_v43, %v1998_v52  ;;  %v1613_v17 = vpop.eup %1612  ;;  %v942_v20 = vmul.f32 %v1611_v11, %v926_v28  ;;  %1017 = vst.msk [vmem:[#allocation6 + $0x18] sm:$0xff] %vm640_vm2, %v1001_v39  ;;  %v929_v52 = vld [vmem:[%s2293_s2 + $0x58] sm:$0xff]  ;;  %v931_v43 = vld [vmem:[%s2293_s2 + $0x68] sm:$0xff] }
 0x206   : > { %957 = vst.msk [vmem:[#allocation5 + $0x38] sm:$0xff] %vm640_vm2, %v941_v1  ;;  %v989_v16 = vmul.f32 %v941_v1, %v2004_v2  ;;  %v1003_v21 = vsub.f32 %v971_v6, %v987_v9  ;;  %v1615_v22 = vpop.eup %1614  ;;  %v943_v24 = vmul.f32 %v1613_v17, %v927_v7  ;;  %v974_v2 = vld [vmem:[%s2294_s3 + $0x40] sm:$0xff]  ;;  %1624 = vrsqrt.f32 %v901_v26  ;;  %v980_v23 = vld [vmem:[%s2294_s3 + $0x70] sm:$0xff]  ;;  %v981_v28 = vld [vmem:[%s2294_s3 + $0x78] sm:$0xff] }
 0x207   : > { %1018 = vst.msk [vmem:[#allocation6 + $0x20] sm:$0xff] %vm640_vm2, %v1002_v8  ;;  %v1004_v27 = vsub.f32 %v972_v10, %v988_v15  ;;  %958 = vst.msk [vmem:[#allocation5 + $0x40] sm:$0xff] %vm640_vm2, %v942_v20  ;;  %v944_v29 = vmul.f32 %v1615_v22, %v928_v12  ;;  %v990_v35 = vmul.f32 %v942_v20, %v2008_v18  ;;  %v1617_v37 = vpop.eup %1616 }
 0x208   : > { %1019 = vst.msk [vmem:[#allocation6 + $0x28] sm:$0xff] %vm640_vm2, %v1003_v21  ;;  %v1005_v32 = vsub.f32 %v973_v45, %v989_v16  ;;  %959 = vst.msk [vmem:[#allocation5 + $0x48] sm:$0xff] %vm640_vm2, %v943_v24  ;;  %v991_v38 = vmul.f32 %v943_v24, %v2010_v25  ;;  %v1619_v41 = vpop.eup %1618  ;;  %v945_v18 = vmul.f32 %v1617_v37, %v929_v52  ;;  %v977_v25 = vld [vmem:[%s2294_s3 + $0x58] sm:$0xff] }
 0x209   : > { %1020 = vst.msk [vmem:[#allocation6 + $0x30] sm:$0xff] %vm640_vm2, %v1004_v27  ;;  %960 = vst.msk [vmem:[#allocation5 + $0x50] sm:$0xff] %vm640_vm2, %v944_v29  ;;  %v1006_v44 = vsub.f32 %v974_v2, %v990_v35  ;;  %v992_v47 = vmul.f32 %v944_v29, %v2014_v31  ;;  %v946_v48 = vmul.f32 %v1619_v41, %v930_v30  ;;  %v1621_v51 = vpop.eup %1620 }
 0x20a   : > { %1021 = vst.msk [vmem:[#allocation6 + $0x38] sm:$0xff] %vm640_vm2, %v1005_v32  ;;  %v1007_v50 = vsub.f32 %v975_v36, %v991_v38  ;;  %961 = vst.msk [vmem:[#allocation5 + $0x58] sm:$0xff] %vm640_vm2, %v945_v18  ;;  %v993_v54 = vmul.f32 %v945_v18, %v2020_v42  ;;  %v947_v31 = vmul.f32 %v1621_v51, %v931_v43  ;;  %v932_v42 = vld [vmem:[%s2293_s2 + $0x70] sm:$0xff] }
 0x20b   : > { %1022 = vst.msk [vmem:[#allocation6 + $0x40] sm:$0xff] %vm640_vm2, %v1006_v44  ;;  %v1008_v53 = vsub.f32 %v976_v40, %v992_v47  ;;  %962 = vst.msk [vmem:[#allocation5 + $0x60] sm:$0xff] %vm640_vm2, %v946_v48  ;;  %v994_v57 = vmul.f32 %v946_v48, %v2025_v49  ;;  %v933_v49 = vld [vmem:[%s2293_s2 + $0x78] sm:$0xff] }
 0x20c   : > { %1023 = vst.msk [vmem:[#allocation6 + $0x48] sm:$0xff] %vm640_vm2, %v1007_v50  ;;  %v1009_v58 = vsub.f32 %v977_v25, %v993_v54  ;;  %963 = vst.msk [vmem:[#allocation5 + $0x68] sm:$0xff] %vm640_vm2, %v947_v31  ;;  %v995_v19 = vmul.f32 %v947_v31, %v2032_v56 }
 0x20d   : > { %1024 = vst.msk [vmem:[#allocation6 + $0x50] sm:$0xff] %vm640_vm2, %v1008_v53  ;;  %v1010_v60 = vsub.f32 %v978_v55, %v994_v57  ;;  %v1623_v61 = vpop.eup %1622 }
 0x20e   : > { %1025 = vst.msk [vmem:[#allocation6 + $0x58] sm:$0xff] %vm640_vm2, %v1009_v58  ;;  %v1011_v62 = vsub.f32 %v979_v59, %v995_v19  ;;  %v948_v63 = vmul.f32 %v1623_v61, %v932_v42 }
 0x20f   : > { %1026 = vst.msk [vmem:[#allocation6 + $0x60] sm:$0xff] %vm640_vm2, %v1010_v60 }
 0x210   : > { %v1625_v0 = vpop.eup %1624  ;;  %1027 = vst.msk [vmem:[#allocation6 + $0x68] sm:$0xff] %vm640_vm2, %v1011_v62  ;;  %964 = vst.msk [vmem:[#allocation5 + $0x70] sm:$0xff] %vm640_vm2, %v948_v63  ;;  %v996_v1 = vmul.f32 %v948_v63, %v2056_v34 }
 0x211   : > { %v949_v56 = vmul.f32 %v1625_v0, %v933_v49 }
 0x212   : > { %v1012_v3 = vsub.f32 %v980_v23, %v996_v1 }
 0x213   : > { %965 = vst.msk [vmem:[#allocation5 + $0x78] sm:$0xff] %vm640_vm2, %v949_v56  ;;  %v997_v4 = vmul.f32 %v949_v56, %v2062_v46 }
 0x214   : > { %1028 = vst.msk [vmem:[#allocation6 + $0x70] sm:$0xff] %vm640_vm2, %v1012_v3 }
 0x215   : > { %v1013_v5 = vsub.f32 %v981_v28, %v997_v4 }
 0x217   : > { %1029 = vst.msk [vmem:[#allocation6 + $0x78] sm:$0xff] %vm640_vm2, %v1013_v5 }
 0x218 PF: > { %p1479_p11 = scmp.ne.s32.totalorder %s1654_s19, 1 }
 0x219   : > { %v1054_v34 = vld [vmem:[#allocation5 + $0x10] sm:$0xff] (!%p1479_p11)  ;;  %v1052_v6 = vld [vmem:[#allocation5] sm:$0xff] (!%p1479_p11)  ;;  %v1669_v7 = vmov (!%p1479_p11), 0   ;;  %v1055_v33 = vld [vmem:[#allocation5 + $0x18] sm:$0xff] (!%p1479_p11)  ;;  %s1480_s19 = sshll.u32 (!%p1479_p11), %s1650_s18, 7  ;;  %vm1324_vm3 = vcmask (!%p1479_p11), 523264  }
 0x21a   : > { %1033 = sbr.rel (%p1479_p11) target bundleno = 734 (0x2de), region = 56  ;;  %1627 = vset.pattern.permute.xlu1 (!%p1479_p11), %v1669_v7  ;;  %1626 = vset.pattern.permute.xlu0 (!%p1479_p11), %v1669_v7  ;;  %v1053_v39 = vld [vmem:[#allocation5 + $0x8] sm:$0xff] (!%p1479_p11)  ;;  %v1056_v8 = vld [vmem:[#allocation5 + $0x20] sm:$0xff] (!%p1479_p11)  ;;  %v1059_v9 = vld [vmem:[#allocation5 + $0x38] sm:$0xff] (!%p1479_p11)  ;;  %s2198_s15 = scalar_lea.vmem (!%p1479_p11), [#allocation2], %s1480_s19 }
 0x21b   : > { %1080 = vperm.xlu1 (!%p1479_p11), %1627, %v1054_v34   ;;  %1070 = vperm.xlu0 (!%p1479_p11), %1626, %v1052_v6   ;;  %v1057_v46 = vld [vmem:[#allocation5 + $0x28] sm:$0xff] (!%p1479_p11)  ;;  %v1058_v10 = vld [vmem:[#allocation5 + $0x30] sm:$0xff] (!%p1479_p11)  ;;  %v1060_v12 = vld [vmem:[#allocation5 + $0x40] sm:$0xff] (!%p1479_p11) }
 0x21c   : > { %v1061_v11 = vld [vmem:[#allocation5 + $0x48] sm:$0xff] (!%p1479_p11)  ;;  %v1063_v13 = vld [vmem:[#allocation5 + $0x58] sm:$0xff] (!%p1479_p11)  ;;  %v1062_v14 = vld [vmem:[#allocation5 + $0x50] sm:$0xff] (!%p1479_p11) }
 0x21d   : > { %v1065_v15 = vld [vmem:[#allocation5 + $0x68] sm:$0xff] (!%p1479_p11)  ;;  %v1064_v45 = vld [vmem:[#allocation5 + $0x60] sm:$0xff] (!%p1479_p11)  ;;  %v1067_v16 = vld [vmem:[#allocation5 + $0x78] sm:$0xff] (!%p1479_p11) }
 0x21e   : > { %v1066_v17 = vld [vmem:[#allocation5 + $0x70] sm:$0xff] (!%p1479_p11)  ;;  %v1165_v20 = vld [vmem:[#allocation6 + $0x8] sm:$0xff] (!%p1479_p11)  ;;  %v1164_v21 = vld [vmem:[#allocation6] sm:$0xff] (!%p1479_p11) }
 0x21f   : > { %1085 = vperm.xlu1 (!%p1479_p11), %1627, %v1055_v33   ;;  %1075 = vperm.xlu0 (!%p1479_p11), %1626, %v1053_v39   ;;  %v1167_v22 = vld [vmem:[#allocation6 + $0x18] sm:$0xff] (!%p1479_p11)  ;;  %v1166_v24 = vld [vmem:[#allocation6 + $0x10] sm:$0xff] (!%p1479_p11)  ;;  %v1169_v52 = vld [vmem:[#allocation6 + $0x28] sm:$0xff] (!%p1479_p11) }
 0x220   : > { %v1168_v26 = vld [vmem:[#allocation6 + $0x20] sm:$0xff] (!%p1479_p11)  ;;  %v1171_v27 = vld [vmem:[#allocation6 + $0x38] sm:$0xff] (!%p1479_p11)  ;;  %v1170_v2 = vld [vmem:[#allocation6 + $0x30] sm:$0xff] (!%p1479_p11) }
 0x221   : > { %v1173_v29 = vld [vmem:[#allocation6 + $0x48] sm:$0xff]  ;;  %v1172_v30 = vld [vmem:[#allocation6 + $0x40] sm:$0xff]  ;;  %v1175_v32 = vld [vmem:[#allocation6 + $0x58] sm:$0xff] }
 0x222   : > { %v1174_v35 = vld [vmem:[#allocation6 + $0x50] sm:$0xff]  ;;  %v1177_v36 = vld [vmem:[#allocation6 + $0x68] sm:$0xff]  ;;  %v1176_v37 = vld [vmem:[#allocation6 + $0x60] sm:$0xff] }
 0x223   : > { %1095 = vperm.xlu1 %1627, %v1057_v46   ;;  %1090 = vperm.xlu0 %1626, %v1056_v8   ;;  %v1179_v38 = vld [vmem:[#allocation6 + $0x78] sm:$0xff]  ;;  %v1178_v40 = vld [vmem:[#allocation6 + $0x70] sm:$0xff]  ;;  %v1036_v58 = vld [vmem:[%s2198_s15] sm:$0xff] }
 0x224   : > { %v1037_v59 = vld [vmem:[%s2198_s15 + $0x8] sm:$0xff]  ;;  %v1038_v19 = vld [vmem:[%s2198_s15 + $0x10] sm:$0xff]  ;;  %v1039_v62 = vld [vmem:[%s2198_s15 + $0x18] sm:$0xff] }
 0x225   : > { %v1277_v63 = vld [vmem:[%s1745_s9 + $0x8] sm:$0xff]  ;;  %v1276_v23 = vld [vmem:[%s1745_s9] sm:$0xff]  ;;  %v1279_v33 = vld [vmem:[%s1745_s9 + $0x18] sm:$0xff] }
 0x226   : > { %v1041_v5 = vld [vmem:[%s2198_s15 + $0x28] sm:$0xff]  ;;  %v1040_v7 = vld [vmem:[%s2198_s15 + $0x20] sm:$0xff]  ;;  %v1278_v46 = vld [vmem:[%s1745_s9 + $0x10] sm:$0xff] }
 0x227   : > { %1105 = vperm.xlu1 %1627, %v1059_v9   ;;  %1100 = vperm.xlu0 %1626, %v1058_v10  }
 0x22b   : > { %1115 = vperm.xlu1 %1627, %v1061_v11   ;;  %1110 = vperm.xlu0 %1626, %v1060_v12  }
 0x22f   : > { %1125 = vperm.xlu1 %1627, %v1063_v13   ;;  %1120 = vperm.xlu0 %1626, %v1062_v14  }
 0x233   : > { %1135 = vperm.xlu1 %1627, %v1065_v15   ;;  %1130 = vperm.xlu0 %1626, %v1064_v45   ;;  %v1043_v15 = vld [vmem:[%s2198_s15 + $0x38] sm:$0xff] }
 0x237   : > { %1145 = vperm.xlu1 %1627, %v1067_v16   ;;  %1140 = vperm.xlu0 %1626, %v1066_v17   ;;  %v1042_v17 = vld [vmem:[%s2198_s15 + $0x30] sm:$0xff] }
 0x23b   : > { %1187 = vperm.xlu1 %1627, %v1165_v20   ;;  %1182 = vperm.xlu0 %1626, %v1164_v21   ;;  %v1281_v20 = vld [vmem:[%s1745_s9 + $0x28] sm:$0xff] }
 0x23f   : > { %1197 = vperm.xlu1 %1627, %v1167_v22   ;;  %1192 = vperm.xlu0 %1626, %v1166_v24   ;;  %v1280_v22 = vld [vmem:[%s1745_s9 + $0x20] sm:$0xff] }
 0x243   : > { %1207 = vperm.xlu1 %1627, %v1169_v52   ;;  %1202 = vperm.xlu0 %1626, %v1168_v26  }
 0x247   : > { %1217 = vperm.xlu1 %1627, %v1171_v27   ;;  %1212 = vperm.xlu0 %1626, %v1170_v2  }
 0x24b   : > { %1227 = vperm.xlu1 %1627, %v1173_v29   ;;  %1222 = vperm.xlu0 %1626, %v1172_v30  }
 0x24f   : > { %1237 = vperm.xlu1 %1627, %v1175_v32   ;;  %1232 = vperm.xlu0 %1626, %v1174_v35   ;;  %v1045_v32 = vld [vmem:[%s2198_s15 + $0x48] sm:$0xff] }
 0x253   : > { %1247 = vperm.xlu1 %1627, %v1177_v36   ;;  %1242 = vperm.xlu0 %1626, %v1176_v37   ;;  %v1044_v37 = vld [vmem:[%s2198_s15 + $0x40] sm:$0xff] }
 0x257   : > { %1257 = vperm.xlu1 %1627, %v1179_v38   ;;  %1252 = vperm.xlu0 %1626, %v1178_v40   ;;  %v1283_v38 = vld [vmem:[%s1745_s9 + $0x38] sm:$0xff] }
 0x29a   : > { %v1081_v41 = vpop.permute.xlu1 %1080  ;;  %v1071_v18 = vpop.permute.xlu0 %1070 }
 0x29b   : > { %v1148_v61 = vmul.f32 %v1071_v18, %v1036_v58  ;;  %v1150_v3 = vmul.f32 %v1081_v41, %v1038_v19  ;;  %v1282_v41 = vld [vmem:[%s1745_s9 + $0x30] sm:$0xff]  ;;  %v1047_v58 = vld [vmem:[%s2198_s15 + $0x58] sm:$0xff] }
 0x29e   : > { %v1086_v43 = vpop.permute.xlu1 %1085  ;;  %v1076_v44 = vpop.permute.xlu0 %1075 }
 0x29f   : > { %v1149_v49 = vmul.f32 %v1076_v44, %v1037_v59  ;;  %v1151_v4 = vmul.f32 %v1086_v43, %v1039_v62 }
 0x2a2   : > { %v1096_v47 = vpop.permute.xlu1 %1095  ;;  %v1091_v48 = vpop.permute.xlu0 %1090 }
 0x2a3   : > { %v1153_v13 = vmul.f32 %v1096_v47, %v1041_v5  ;;  %v1152_v14 = vmul.f32 %v1091_v48, %v1040_v7 }
 0x2a6   : > { %v1106_v50 = vpop.permute.xlu1 %1105  ;;  %v1101_v25 = vpop.permute.xlu0 %1100 }
 0x2a7   : > { %v1155_v29 = vmul.f32 %v1106_v50, %v1043_v15  ;;  %v1154_v30 = vmul.f32 %v1101_v25, %v1042_v17  ;;  %v1289_v15 = vld [vmem:[%s1745_s9 + $0x68] sm:$0xff] }
 0x2aa   : > { %v2185_v51 = vpop.permute.xlu1 %1115  ;;  %v2187_v53 = vpop.permute.xlu0 %1110 }
 0x2ab   : > { %v1157_v50 = vmul.f32 %v2185_v51, %v1045_v32  ;;  %v1156_v25 = vmul.f32 %v2187_v53, %v1044_v37 }
 0x2ae   : > { %v2189_v54 = vpop.permute.xlu1 %1125  ;;  %v2191_v55 = vpop.permute.xlu0 %1120 }
 0x2b2   : > { %v2194_v31 = vpop.permute.xlu1 %1135  ;;  %v2196_v57 = vpop.permute.xlu0 %1130 }
 0x2b6   : > { %v2202_v42 = vpop.permute.xlu1 %1145  ;;  %v2204_v60 = vpop.permute.xlu0 %1140 }
 0x2ba   : > { %v1188_v0 = vpop.permute.xlu1 %1187  ;;  %v1183_v56 = vpop.permute.xlu0 %1182 }
 0x2bb   : > { %v1261_v1 = vadd.f32 %v1188_v0, %v1149_v49  ;;  %v1260_v28 = vadd.f32 %v1183_v56, %v1148_v61  ;;  %v1046_v61 = vld [vmem:[%s2198_s15 + $0x50] sm:$0xff]  ;;  %v1285_v49 = vld [vmem:[%s1745_s9 + $0x48] sm:$0xff] }
 0x2bd   : > { %v1293_v34 = vadd.f32 %v1277_v63, %v1261_v1  ;;  %v1292_v6 = vadd.f32 %v1276_v23, %v1260_v28  ;;  %v1284_v63 = vld [vmem:[%s1745_s9 + $0x40] sm:$0xff]  ;;  %v1159_v1 = vmul.f32 %v2189_v54, %v1047_v58  ;;  %v1158_v28 = vmul.f32 %v2191_v55, %v1046_v61 }
 0x2be   : > { %v1198_v39 = vpop.permute.xlu1 %1197  ;;  %v1193_v8 = vpop.permute.xlu0 %1192 }
 0x2bf   : > { %v1309_v9 = vmax.f32 %v1293_v34, 0.0  ;;  %v1308_v10 = vmax.f32 %v1292_v6, 0.0  ;;  %v1263_v11 = vadd.f32 %v1198_v39, %v1151_v4  ;;  %v1262_v12 = vadd.f32 %v1193_v8, %v1150_v3  ;;  %v1049_v3 = vld [vmem:[%s2198_s15 + $0x68] sm:$0xff]  ;;  %v1048_v34 = vld [vmem:[%s2198_s15 + $0x60] sm:$0xff]  ;;  %v1287_v6 = vld [vmem:[%s1745_s9 + $0x58] sm:$0xff] }
 0x2c1   : > { %1326 = vst.msk [vmem:[%s1750_s12 + $0x8] sm:$0xff] %vm1324_vm3, %v1309_v9  ;;  %1325 = vst.msk [vmem:[%s1750_s12] sm:$0xff] %vm1324_vm3, %v1308_v10  ;;  %v1295_v45 = vadd.f32 %v1279_v33, %v1263_v11  ;;  %v1294_v16 = vadd.f32 %v1278_v46, %v1262_v12  ;;  %v1286_v33 = vld [vmem:[%s1745_s9 + $0x50] sm:$0xff]  ;;  %v1161_v9 = vmul.f32 %v2194_v31, %v1049_v3  ;;  %v1051_v11 = vld [vmem:[%s2198_s15 + $0x78] sm:$0xff] }
 0x2c2   : > { %v1208_v21 = vpop.permute.xlu1 %1207  ;;  %v1203_v24 = vpop.permute.xlu0 %1202  ;;  %v1160_v10 = vmul.f32 %v2196_v57, %v1048_v34 }
 0x2c3   : > { %v1311_v52 = vmax.f32 %v1295_v45, 0.0  ;;  %v1310_v26 = vmax.f32 %v1294_v16, 0.0  ;;  %v1265_v27 = vadd.f32 %v1208_v21, %v1153_v13  ;;  %v1264_v2 = vadd.f32 %v1203_v24, %v1152_v14  ;;  %v1050_v14 = vld [vmem:[%s2198_s15 + $0x70] sm:$0xff]  ;;  %v1288_v16 = vld [vmem:[%s1745_s9 + $0x60] sm:$0xff] }
 0x2c4   : > { %v1162_v24 = vmul.f32 %v2204_v60, %v1050_v14 }
 0x2c5   : > { %1328 = vst.msk [vmem:[%s1750_s12 + $0x18] sm:$0xff] %vm1324_vm3, %v1311_v52  ;;  %1327 = vst.msk [vmem:[%s1750_s12 + $0x10] sm:$0xff] %vm1324_vm3, %v1310_v26  ;;  %v1297_v35 = vadd.f32 %v1281_v20, %v1265_v27  ;;  %v1296_v36 = vadd.f32 %v1280_v22, %v1264_v2  ;;  %v1163_v22 = vmul.f32 %v2202_v42, %v1051_v11  ;;  %v1291_v27 = vld [vmem:[%s1745_s9 + $0x78] sm:$0xff] }
 0x2c6   : > { %v1218_v40 = vpop.permute.xlu1 %1217  ;;  %v1213_v18 = vpop.permute.xlu0 %1212 }
 0x2c7   : > { %v1313_v43 = vmax.f32 %v1297_v35, 0.0  ;;  %v1312_v44 = vmax.f32 %v1296_v36, 0.0  ;;  %v1267_v47 = vadd.f32 %v1218_v40, %v1155_v29  ;;  %v1266_v48 = vadd.f32 %v1213_v18, %v1154_v30  ;;  %v1290_v29 = vld [vmem:[%s1745_s9 + $0x70] sm:$0xff] }
 0x2c9   : > { %1330 = vst.msk [vmem:[%s1750_s12 + $0x28] sm:$0xff] %vm1324_vm3, %v1313_v43  ;;  %1329 = vst.msk [vmem:[%s1750_s12 + $0x20] sm:$0xff] %vm1324_vm3, %v1312_v44  ;;  %v1299_v59 = vadd.f32 %v1283_v38, %v1267_v47  ;;  %v1298_v19 = vadd.f32 %v1282_v41, %v1266_v48 }
 0x2ca   : > { %v1228_v62 = vpop.permute.xlu1 %1227  ;;  %v1223_v51 = vpop.permute.xlu0 %1222 }
 0x2cb   : > { %v1315_v0 = vmax.f32 %v1299_v59, 0.0  ;;  %v1314_v53 = vmax.f32 %v1298_v19, 0.0  ;;  %v1269_v23 = vadd.f32 %v1228_v62, %v1157_v50  ;;  %v1268_v56 = vadd.f32 %v1223_v51, %v1156_v25 }
 0x2cd   : > { %1332 = vst.msk [vmem:[%s1750_s12 + $0x38] sm:$0xff] %vm1324_vm3, %v1315_v0  ;;  %1331 = vst.msk [vmem:[%s1750_s12 + $0x30] sm:$0xff] %vm1324_vm3, %v1314_v53  ;;  %v1301_v4 = vadd.f32 %v1285_v49, %v1269_v23  ;;  %v1300_v5 = vadd.f32 %v1284_v63, %v1268_v56 }
 0x2ce   : > { %v1238_v7 = vpop.permute.xlu1 %1237  ;;  %v1233_v54 = vpop.permute.xlu0 %1232 }
 0x2cf   : > { %v1317_v39 = vmax.f32 %v1301_v4, 0.0  ;;  %v1316_v55 = vmax.f32 %v1300_v5, 0.0  ;;  %v1271_v46 = vadd.f32 %v1238_v7, %v1159_v1  ;;  %v1270_v8 = vadd.f32 %v1233_v54, %v1158_v28 }
 0x2d1   : > { %1334 = vst.msk [vmem:[%s1750_s12 + $0x48] sm:$0xff] %vm1324_vm3, %v1317_v39  ;;  %1333 = vst.msk [vmem:[%s1750_s12 + $0x40] sm:$0xff] %vm1324_vm3, %v1316_v55  ;;  %v1303_v12 = vadd.f32 %v1287_v6, %v1271_v46  ;;  %v1302_v13 = vadd.f32 %v1286_v33, %v1270_v8 }
 0x2d2   : > { %v1248_v45 = vpop.permute.xlu1 %1247  ;;  %v1243_v17 = vpop.permute.xlu0 %1242 }
 0x2d3   : > { %v1319_v20 = vmax.f32 %v1303_v12, 0.0  ;;  %v1318_v31 = vmax.f32 %v1302_v13, 0.0  ;;  %v1273_v21 = vadd.f32 %v1248_v45, %v1161_v9  ;;  %v1272_v57 = vadd.f32 %v1243_v17, %v1160_v10 }
 0x2d5   : > { %1336 = vst.msk [vmem:[%s1750_s12 + $0x58] sm:$0xff] %vm1324_vm3, %v1319_v20  ;;  %1335 = vst.msk [vmem:[%s1750_s12 + $0x50] sm:$0xff] %vm1324_vm3, %v1318_v31  ;;  %v1305_v52 = vadd.f32 %v1289_v15, %v1273_v21  ;;  %v1304_v26 = vadd.f32 %v1288_v16, %v1272_v57 }
 0x2d6   : > { %v1258_v2 = vpop.permute.xlu1 %1257  ;;  %v1253_v30 = vpop.permute.xlu0 %1252 }
 0x2d7   : > { %v1321_v32 = vmax.f32 %v1305_v52, 0.0  ;;  %v1320_v35 = vmax.f32 %v1304_v26, 0.0  ;;  %v1275_v36 = vadd.f32 %v1258_v2, %v1163_v22  ;;  %v1274_v37 = vadd.f32 %v1253_v30, %v1162_v24 }
 0x2d9   : > { %1338 = vst.msk [vmem:[%s1750_s12 + $0x68] sm:$0xff] %vm1324_vm3, %v1321_v32  ;;  %1337 = vst.msk [vmem:[%s1750_s12 + $0x60] sm:$0xff] %vm1324_vm3, %v1320_v35  ;;  %v1307_v42 = vadd.f32 %v1291_v27, %v1275_v36  ;;  %v1306_v60 = vadd.f32 %v1290_v29, %v1274_v37 }
 0x2db   : > { %v1323_v38 = vmax.f32 %v1307_v42, 0.0  ;;  %v1322_v40 = vmax.f32 %v1306_v60, 0.0 }
 0x2dd   : > { %1340 = vst.msk [vmem:[%s1750_s12 + $0x78] sm:$0xff] %vm1324_vm3, %v1323_v38  ;;  %1339 = vst.msk [vmem:[%s1750_s12 + $0x70] sm:$0xff] %vm1324_vm3, %v1322_v40 }
 0x2de PF: > { %s15_s22 = sadd.s32 1, %s1666_s22   ;;  %s2297_s18 = smov %s1658_s20 }
 0x2df   : > { %p12_p12 = scmp.ge.s32.totalorder %s15_s22, 6   ;;  %s2298_s19 = smov %s1662_s21 }
 0x2e0   : > { %s2299_s20 = smov %s2302_s23  ;;  %s2300_s21 = smov %s2306_s24 }
 0x2e1   :  { %14 = sbr.rel (!%p12_p12) target bundleno = 3 (0x3), region = 91 }

</bundles_post_ra>
